<compile_context>
chip_gen: v7x
topology: tpu7x:2x2x1
jax: 0.10.0
libtpu: 0.0.40
codegen_flags: <defaults>
</compile_context>

<pallas_src>
import functools

import jax
import jax.numpy as jnp
from jax.experimental import pallas as pl
from jax.experimental.pallas import tpu as pltpu


def _pow_static(x, beta):
    """x ** beta with a static (Python) beta.

    Integer betas become repeated VPU multiplies (no EUP exp/log pair).
    Non-integer betas keep the module's exact `pt ** beta` semantics
    (NaN for a negative base, same as torch.pow).
    """
    b = float(beta)
    if b == 2.0:
        return x * x
    if b.is_integer() and 0.0 <= b <= 8.0:
        n = int(b)
        if n == 0:
            return jnp.ones_like(x)
        out = x
        for _ in range(n - 1):
            out = out * x
        return out
    return x ** beta


def _qfl_kernel(pred_ref, tgt_ref, score_ref, out_ref, acc_ref, *,
                beta, n_valid, tile_n, blocks_per_split, needs_mask):
    c = pl.program_id(0)          # split axis ("parallel": shards over cores)
    i = pl.program_id(1)          # reduction axis ("arbitrary")

    @pl.when(i == 0)
    def _():
        acc_ref[...] = jnp.zeros_like(acc_ref)

    x = pred_ref[...].astype(jnp.float32)            # (tile_n, C) logits
    s = score_ref[...].astype(jnp.float32)           # (tile_n, 1)
    t = tgt_ref[...].astype(jnp.float32) * s         # broadcast over classes

    # One exp(-|x|) shared by the numerically-stable BCE and the sigmoid.
    e = jnp.exp(-jnp.abs(x))
    ce = jnp.maximum(x, 0.0) - x * t + jnp.log1p(e)
    inv = 1.0 / (1.0 + e)
    p = jnp.where(x >= 0, inv, e * inv)              # == sigmoid(x)

    loss = ce * _pow_static(p - t, beta)

    if needs_mask:
        # Only the block(s) overhanging the true N (tail / clamped duplicate
        # blocks) pay the iota+select mask; interior blocks accumulate raw.
        blk = c * blocks_per_split + i               # unclamped block index
        is_tail = (blk + 1) * tile_n > n_valid

        @pl.when(jnp.logical_not(is_tail))
        def _():
            acc_ref[...] += loss

        @pl.when(is_tail)
        def _():
            row = jax.lax.broadcasted_iota(jnp.int32, loss.shape, 0)
            valid = (blk * tile_n + row) < n_valid
            acc_ref[...] += jnp.where(valid, loss, 0.0)
    else:
        # Elementwise accumulate (pure VPU); no per-tile cross-lane reduce.
        acc_ref[...] += loss

    @pl.when(i == pl.num_programs(1) - 1)
    def _():
        total = jnp.sum(acc_ref[...])                # single XLU reduce / split
        out_ref[...] = jnp.full((8, 128), total, dtype=jnp.float32)


def quality_focal_loss_pallas(pred, target, score, *, beta=2.0,
                              loss_weight=1.0, reduction="mean",
                              tile_n=None, num_splits=2):
    """QFL forward. pred/target: (N, C) float, score: (N,) float."""
    # TODO(synk): elementwise `weight`, `avg_factor`, and reduction='none'
    # paths are not implemented in-kernel (module defaults use none of them).
    assert reduction in ("mean", "sum")
    N, C = pred.shape
    c_pad = ((C + 127) // 128) * 128                 # lane-padded width in VMEM

    # Auto tile: biggest row tile whose lane-padded block stays ~<=1 MiB,
    # capped at 4096 rows; no host-side padding of the inputs is needed —
    # partial trailing blocks are masked in-kernel.
    if tile_n is None:
        tile_n = (1 << 20) // (c_pad * 4)
        tile_n = max(8, min(4096, (tile_n // 8) * 8))
    tile_n = max(8, (int(tile_n) // 8) * 8)
    n_ceil = ((N + 7) // 8) * 8
    tile_n = min(tile_n, n_ceil)

    score2d = score.reshape(N, 1)

    blocks_total = pl.cdiv(N, tile_n)
    num_splits = max(1, min(int(num_splits), blocks_total))
    bps = pl.cdiv(blocks_total, num_splits)          # blocks per split
    needs_mask = (num_splits * bps * tile_n) != N

    def row_map(c, i):
        # Clamp so padded split-blocks re-read a valid block (fully masked).
        return (jnp.minimum(c * bps + i, blocks_total - 1), 0)

    blk_bytes = tile_n * c_pad * 4
    score_blk_bytes = tile_n * 128 * 4               # (tile_n, 1) pads lanes
    est = 2 * 2 * blk_bytes + 2 * score_blk_bytes + blk_bytes + 2 * 8 * 128 * 4
    vmem_limit = int(min(max(int(1.5 * est), 16 << 20), 32 << 20))

    partials = pl.pallas_call(
        functools.partial(_qfl_kernel, beta=beta, n_valid=N, tile_n=tile_n,
                          blocks_per_split=bps, needs_mask=needs_mask),
        out_shape=jax.ShapeDtypeStruct((num_splits * 8, 128), jnp.float32),
        grid_spec=pltpu.PrefetchScalarGridSpec(
            num_scalar_prefetch=0,
            grid=(num_splits, bps),
            in_specs=[
                pl.BlockSpec((tile_n, C), row_map),
                pl.BlockSpec((tile_n, C), row_map),
                pl.BlockSpec((tile_n, 1), row_map),
            ],
            out_specs=pl.BlockSpec((8, 128), lambda c, i: (c, 0)),
            scratch_shapes=[pltpu.VMEM((tile_n, C), jnp.float32)],
        ),
        compiler_params=pltpu.CompilerParams(
            dimension_semantics=("parallel", "arbitrary"),
            vmem_limit_bytes=vmem_limit),
    )(pred, target, score2d)

    # Each split broadcast its scalar total into its (8, 128) block.
    split_totals = partials.reshape(num_splits, 8, 128)[:, 0, 0]
    total = jnp.sum(split_totals)
    if reduction == "mean":
        total = total / jnp.float32(N * C)
    return jnp.float32(loss_weight) * total


def _qfl_reference(pred, target, score, beta=2.0, loss_weight=1.0):
    x = pred.astype(jnp.float32)
    t = target.astype(jnp.float32) * score.astype(jnp.float32)[:, None]
    ce = jnp.maximum(x, 0.0) - x * t + jnp.log1p(jnp.exp(-jnp.abs(x)))
    p = jax.nn.sigmoid(x)
    loss = ce * (p - t) ** beta
    return loss_weight * jnp.mean(loss)


if __name__ == "__main__":
    key = jax.random.PRNGKey(0)
    kp, kt, ks = jax.random.split(key, 3)

    # Small, deliberately awkward shapes: N not a multiple of 8 (exercises the
    # partial trailing block + tail mask), C = 80 classes (COCO-like).
    N, C = 150, 80
    pred = jax.random.normal(kp, (N, C), dtype=jnp.float32) * 2.0
    labels = jax.random.randint(kt, (N,), 0, C)
    target = jax.nn.one_hot(labels, C, dtype=jnp.float32)
    score = jax.random.uniform(ks, (N,), dtype=jnp.float32)

    ref = _qfl_reference(pred, target, score, beta=2.0, loss_weight=1.0)

    # 1) default (large) tile path — single partial block, no host padding
    out = quality_focal_loss_pallas(pred, target, score, beta=2.0,
                                    loss_weight=1.0, reduction="mean")
    out = jax.block_until_ready(out)
    assert jnp.allclose(out, ref, rtol=2e-5, atol=1e-6), (out, ref)

    # 2) small tiles: exercises multi-block reduction, the 2-way parallel
    #    split, and the clamped / masked trailing blocks
    out2 = quality_focal_loss_pallas(pred, target, score, beta=2.0,
                                     loss_weight=1.0, reduction="mean",
                                     tile_n=64)
    out2 = jax.block_until_ready(out2)
    assert jnp.allclose(out2, ref, rtol=2e-5, atol=1e-6), (out2, ref)

    # 3) sum reduction path
    ref_sum = ref * jnp.float32(N * C)
    out3 = quality_focal_loss_pallas(pred, target, score, beta=2.0,
                                     loss_weight=1.0, reduction="sum")
    out3 = jax.block_until_ready(out3)
    assert jnp.allclose(out3, ref_sum, rtol=2e-5, atol=1e-4), (out3, ref_sum)

    print("KERNEL_OK")
</pallas_src>

<mosaic_0001>
module attributes {stable_mosaic.version = 11 : i64} {
  func.func @_qfl_kernel(%arg0: i32, %arg1: i32, %arg2: memref<152x80xf32, #tpu.memory_space<vmem>>, %arg3: memref<152x80xf32, #tpu.memory_space<vmem>>, %arg4: memref<152x1xf32, #tpu.memory_space<vmem>>, %arg5: memref<8x128xf32, #tpu.memory_space<vmem>>, %arg6: memref<152x80xf32, #tpu.memory_space<vmem>>) attributes {dimension_semantics = [#tpu.dimension_semantics<parallel>, #tpu.dimension_semantics<arbitrary>], iteration_bounds = array<i64: 1, 1>, scalar_prefetch = 0 : i64, scratch_operands = 1 : i64, tpu.core_type = #tpu.core_type<tc>, window_params = [{transform_indices = @transform_0, window_bounds = array<i64: 152, 80>}, {transform_indices = @transform_1, window_bounds = array<i64: 152, 80>}, {transform_indices = @transform_2, window_bounds = array<i64: 152, 1>}, {transform_indices = @transform_3, window_bounds = array<i64: 8, 128>}]} {
    %c0_i32 = arith.constant 0 : i32
    %0 = arith.cmpi eq, %arg1, %c0_i32 : i32
    %1 = arith.extui %0 : i1 to i32
    %c0_i32_0 = arith.constant 0 : i32
    %2 = arith.cmpi ne, %1, %c0_i32_0 : i32
    scf.if %2 {
      %cst_15 = arith.constant 0.000000e+00 : f32
      %42 = vector.broadcast %cst_15 : f32 to vector<152x80xf32>
      %c0_16 = arith.constant 0 : index
      %c0_17 = arith.constant 0 : index
      %43 = vector.load %arg6[%c0_16, %c0_17] : memref<152x80xf32, #tpu.memory_space<vmem>>, vector<152x80xf32>
      tpu.vector_store %arg6[%c0_16, %c0_17], %42 {strides = array<i32>} : memref<152x80xf32, #tpu.memory_space<vmem>>, vector<152x80xf32>,
    } else {
    }
    %c0 = arith.constant 0 : index
    %c0_1 = arith.constant 0 : index
    %3 = vector.load %arg2[%c0, %c0_1] : memref<152x80xf32, #tpu.memory_space<vmem>>, vector<152x80xf32>
    %c0_2 = arith.constant 0 : index
    %c0_3 = arith.constant 0 : index
    %4 = vector.load %arg4[%c0_2, %c0_3] : memref<152x1xf32, #tpu.memory_space<vmem>>, vector<152x1xf32>
    %c0_4 = arith.constant 0 : index
    %c0_5 = arith.constant 0 : index
    %5 = vector.load %arg3[%c0_4, %c0_5] : memref<152x80xf32, #tpu.memory_space<vmem>>, vector<152x80xf32>
    %6 = vector.broadcast %4 : vector<152x1xf32> to vector<152x80xf32>
    %7 = arith.mulf %5, %6 : vector<152x80xf32>
    %8 = math.absf %3 : vector<152x80xf32>
    %cst = arith.constant 0.000000e+00 : f32
    %9 = vector.broadcast %cst : f32 to vector<152x80xf32>
    %10 = arith.subf %9, %8 : vector<152x80xf32>
    %11 = math.exp %10 : vector<152x80xf32>
    %cst_6 = arith.constant 0.000000e+00 : f32
    %12 = vector.broadcast %cst_6 : f32 to vector<152x80xf32>
    %13 = arith.maximumf %3, %12 : vector<152x80xf32>
    %14 = arith.mulf %3, %7 : vector<152x80xf32>
    %15 = arith.subf %13, %14 : vector<152x80xf32>
    %16 = math.log1p %11 : vector<152x80xf32>
    %17 = arith.addf %15, %16 : vector<152x80xf32>
    %cst_7 = arith.constant 1.000000e+00 : f32
    %18 = vector.broadcast %cst_7 : f32 to vector<152x80xf32>
    %19 = arith.addf %18, %11 : vector<152x80xf32>
    %cst_8 = arith.constant 1.000000e+00 : f32
    %20 = vector.broadcast %cst_8 : f32 to vector<152x80xf32>
    %21 = arith.divf %20, %19 : vector<152x80xf32>
    %cst_9 = arith.constant 0.000000e+00 : f32
    %22 = vector.broadcast %cst_9 : f32 to vector<152x80xf32>
    %23 = arith.cmpf oge, %3, %22 : vector<152x80xf32>
    %24 = arith.mulf %11, %21 : vector<152x80xf32>
    %25 = arith.select %23, %21, %24 : vector<152x80xi1>, vector<152x80xf32>
    %26 = arith.subf %25, %7 : vector<152x80xf32>
    %27 = arith.mulf %26, %26 : vector<152x80xf32>
    %28 = arith.mulf %17, %27 : vector<152x80xf32>
    %c1_i32 = arith.constant 1 : i32
    %29 = arith.muli %arg0, %c1_i32 : i32
    %30 = arith.addi %29, %arg1 : i32
    %c1_i32_10 = arith.constant 1 : i32
    %31 = arith.addi %30, %c1_i32_10 : i32
    %c152_i32 = arith.constant 152 : i32
    %32 = arith.muli %31, %c152_i32 : i32
    %c150_i32 = arith.constant 150 : i32
    %33 = arith.cmpi sgt, %32, %c150_i32 : i32
    %true = arith.constant true
    %34 = arith.xori %33, %true : i1
    %35 = arith.extui %34 : i1 to i32
    %c0_i32_11 = arith.constant 0 : i32
    %36 = arith.cmpi ne, %35, %c0_i32_11 : i32
    scf.if %36 {
      %c0_15 = arith.constant 0 : index
      %c0_16 = arith.constant 0 : index
      %42 = vector.load %arg6[%c0_15, %c0_16] : memref<152x80xf32, #tpu.memory_space<vmem>>, vector<152x80xf32>
      %43 = arith.addf %42, %28 : vector<152x80xf32>
      %c0_17 = arith.constant 0 : index
      %c0_18 = arith.constant 0 : index
      %44 = vector.load %arg6[%c0_17, %c0_18] : memref<152x80xf32, #tpu.memory_space<vmem>>, vector<152x80xf32>
      tpu.vector_store %arg6[%c0_17, %c0_18], %43 {strides = array<i32>} : memref<152x80xf32, #tpu.memory_space<vmem>>, vector<152x80xf32>,
    } else {
    }
    %37 = arith.extui %33 : i1 to i32
    %c0_i32_12 = arith.constant 0 : i32
    %38 = arith.cmpi ne, %37, %c0_i32_12 : i32
    scf.if %38 {
      %42 = tpu.iota {dimensions = array<i32: 0>} : vector<152x80xi32>
      %c152_i32_15 = arith.constant 152 : i32
      %43 = arith.muli %30, %c152_i32_15 : i32
      %44 = vector.broadcast %43 : i32 to vector<152x80xi32>
      %45 = arith.addi %44, %42 : vector<152x80xi32>
      %c150_i32_16 = arith.constant 150 : i32
      %46 = vector.broadcast %c150_i32_16 : i32 to vector<152x80xi32>
      %47 = arith.cmpi slt, %45, %46 : vector<152x80xi32>
      %c0_17 = arith.constant 0 : index
      %c0_18 = arith.constant 0 : index
      %48 = vector.load %arg6[%c0_17, %c0_18] : memref<152x80xf32, #tpu.memory_space<vmem>>, vector<152x80xf32>
      %cst_19 = arith.constant 0.000000e+00 : f32
      %49 = vector.broadcast %cst_19 : f32 to vector<152x80xf32>
      %50 = arith.select %47, %28, %49 : vector<152x80xi1>, vector<152x80xf32>
      %51 = arith.addf %48, %50 : vector<152x80xf32>
      %c0_20 = arith.constant 0 : index
      %c0_21 = arith.constant 0 : index
      %52 = vector.load %arg6[%c0_20, %c0_21] : memref<152x80xf32, #tpu.memory_space<vmem>>, vector<152x80xf32>
      tpu.vector_store %arg6[%c0_20, %c0_21], %51 {strides = array<i32>} : memref<152x80xf32, #tpu.memory_space<vmem>>, vector<152x80xf32>,
    } else {
    }
    %c0_i32_13 = arith.constant 0 : i32
    %39 = arith.cmpi eq, %arg1, %c0_i32_13 : i32
    %40 = arith.extui %39 : i1 to i32
    %c0_i32_14 = arith.constant 0 : i32
    %41 = arith.cmpi ne, %40, %c0_i32_14 : i32
    scf.if %41 {
      %c0_15 = arith.constant 0 : index
      %c0_16 = arith.constant 0 : index
      %42 = vector.load %arg6[%c0_15, %c0_16] : memref<152x80xf32, #tpu.memory_space<vmem>>, vector<152x80xf32>
      %43 = vector.shape_cast %42 : vector<152x80xf32> to vector<1x152x80xf32>
      %cst_17 = arith.constant dense<0.000000e+00> : vector<1xf32>
      %44 = vector.multi_reduction <add>, %43, %cst_17 [1, 2] : vector<1x152x80xf32> to vector<1xf32>
      %45 = vector.shape_cast %44 : vector<1xf32> to vector<1x1x1xf32>
      %46 = vector.extract %45[0, 0, 0] : f32 from vector<1x1x1xf32>
      %47 = vector.broadcast %46 : f32 to vector<8x128xf32>
      %c0_18 = arith.constant 0 : index
      %c0_19 = arith.constant 0 : index
      %48 = vector.load %arg5[%c0_18, %c0_19] : memref<8x128xf32, #tpu.memory_space<vmem>>, vector<8x128xf32>
      tpu.vector_store %arg5[%c0_18, %c0_19], %47 {strides = array<i32>} : memref<8x128xf32, #tpu.memory_space<vmem>>, vector<8x128xf32>,
    } else {
    }
    return
  }
  func.func @transform_0(%arg0: i32, %arg1: i32) -> (i32, i32) {
    %c1_i32 = arith.constant 1 : i32
    %0 = arith.muli %arg0, %c1_i32 : i32
    %1 = arith.addi %0, %arg1 : i32
    %c0_i32 = arith.constant 0 : i32
    %2 = arith.minsi %1, %c0_i32 : i32
    %c0_i32_0 = arith.constant 0 : i32
    %c0_i32_1 = arith.constant 0 : i32
    return %2, %c0_i32_0 : i32, i32
  }
  func.func @transform_1(%arg0: i32, %arg1: i32) -> (i32, i32) {
    %c1_i32 = arith.constant 1 : i32
    %0 = arith.muli %arg0, %c1_i32 : i32
    %1 = arith.addi %0, %arg1 : i32
    %c0_i32 = arith.constant 0 : i32
    %2 = arith.minsi %1, %c0_i32 : i32
    %c0_i32_0 = arith.constant 0 : i32
    %c0_i32_1 = arith.constant 0 : i32
    return %2, %c0_i32_0 : i32, i32
  }
  func.func @transform_2(%arg0: i32, %arg1: i32) -> (i32, i32) {
    %c1_i32 = arith.constant 1 : i32
    %0 = arith.muli %arg0, %c1_i32 : i32
    %1 = arith.addi %0, %arg1 : i32
    %c0_i32 = arith.constant 0 : i32
    %2 = arith.minsi %1, %c0_i32 : i32
    %c0_i32_0 = arith.constant 0 : i32
    %c0_i32_1 = arith.constant 0 : i32
    return %2, %c0_i32_0 : i32, i32
  }
  func.func @transform_3(%arg0: i32, %arg1: i32) -> (i32, i32) {
    %c0_i32 = arith.constant 0 : i32
    %c0_i32_0 = arith.constant 0 : i32
    return %arg0, %c0_i32 : i32, i32
  }
}

</mosaic_0001>

<bundles_post_ra>
// kernel: tpu_custom_call.1
= control target key start
LH: loop header
LB: loop body
LE: loop exit
PB: predicated region body
PF: predicated region fallthrough
CT: control target
= control target key end

     0   :  { %8 = vsyncpa [#allocation4], 0  ;;  %s2215_s0 = inlined_call_operand.vmem [shape: f32[150,80], index: 0, kind: input, shape index: {}]   ;;  %s2216_s1 = inlined_call_operand.hbm [shape: f32[150,80], index: 1, kind: input, shape index: {}]   ;;  %s2217_s2 = inlined_call_operand.vmem [shape: f32[150,1], index: 2, kind: input, shape index: {}]   ;;  %s2218_s3 = inlined_call_operand.hbm [shape: f32[8,128], index: 3, kind: output, shape index: {}]  }
   0x1   :  { %9 = vsyncpa [#allocation5], 0  ;;  %s1270_s12 = smov [#allocation3]   ;;  %s1222_s16 = scalar_lea.hbm %s2216_s1, 2432 }
   0x2   :  { %s35_s13 = sshll.u32 %s1270_s12, 4  ;;  %p1223_p0 = scmp.ne.s32.totalorder %s2216_s1, %s1222_s16  ;;  %s36_s13 = int_to_ptr.vmem [resolvable:$true] %s35_s13 }
   0x3   :  { %p1226_p1 = scmp.lt.u32.totalorder %s1222_s16, %s2216_s1 }
   0x5   :  { %p1228_p2 = pnand %p1226_p1, %p1223_p0 }
   0x7   :  { %1231 = shalt.err (!%p1228_p2)
}
   0x8   :  { %s1232_s21 = scalar_lea.vmem %s36_s13, 2432  ;;  %p1237_p4 = scmp.lt.s32.totalorder %s36_s13, %s36_s13 }
   0x9   :  { %p1233_p3 = scmp.ne.s32.totalorder %s36_s13, %s1232_s21  ;;  %p1238_p5 = scmp.lt.s32.totalorder %s1232_s21, %s1232_s21 }
   0xb   :  { %p1239_p6 = por %p1238_p5, %p1237_p4 }
   0xd   :  { %p1240_p7 = pnand %p1239_p6, %p1233_p3 }
   0xf   :  { %1243 = shalt.err (!%p1240_p7)
}
  0x10   :  { %s1271_s22 = smov 128   ;;  %s1272_s23 = smov 8  }
  0x11   :  { %41 = dma.hbm_to_vmem [thread:$0]  %s2216_s1, 2432, %s36_s13, [#allocation4], %s1271_s22, %s1271_s22, %s1272_s23  }
  0x12   :  { %1266 = dma.done.wait [#allocation4], 2432  }
  0x13   :  { %1267 = vsyncadd [#allocation4], 4294964864  ;;  %vm2247_vm0 = vcmask 654336   ;;  %v1273_v0 = vmov 0   ;;  %v1274_v1 = vmov 0.0   ;;  %v148_v2 = vld [vmem:[%s2217_s2 + $0x10] sm:$0xff] }
  0x14   :  { %1107 = vset.pattern.permute.xlu1 %v1273_v0  ;;  %1106 = vset.pattern.permute.xlu0 %v1273_v0  ;;  %110 = vst.msk [vmem:[#allocation2 + $0x10] sm:$0xff] %vm2247_vm0, %v1274_v1  ;;  %108 = vst.msk [vmem:[#allocation2] sm:$0xff] %vm2247_vm0, %v1274_v1  ;;  %v146_v3 = vld [vmem:[%s2217_s2] sm:$0xff]  ;;  %v149_v4 = vld [vmem:[%s2217_s2 + $0x18] sm:$0xff] }
  0x15   :  { %109 = vst.msk [vmem:[#allocation2 + $0x8] sm:$0xff] %vm2247_vm0, %v1274_v1  ;;  %111 = vst.msk [vmem:[#allocation2 + $0x18] sm:$0xff] %vm2247_vm0, %v1274_v1  ;;  %196 = vperm.xlu1 %1107, %v148_v2   ;;  %186 = vperm.xlu0 %1106, %v146_v3   ;;  %v147_v5 = vld [vmem:[%s2217_s2 + $0x8] sm:$0xff]  ;;  %v150_v7 = vld [vmem:[%s2217_s2 + $0x20] sm:$0xff] }
  0x16   :  { %112 = vst.msk [vmem:[#allocation2 + $0x20] sm:$0xff] %vm2247_vm0, %v1274_v1  ;;  %113 = vst.msk [vmem:[#allocation2 + $0x28] sm:$0xff] %vm2247_vm0, %v1274_v1  ;;  %v151_v6 = vld [vmem:[%s2217_s2 + $0x28] sm:$0xff]  ;;  %v153_v8 = vld [vmem:[%s2217_s2 + $0x38] sm:$0xff] }
  0x17   :  { %114 = vst.msk [vmem:[#allocation2 + $0x30] sm:$0xff] %vm2247_vm0, %v1274_v1  ;;  %115 = vst.msk [vmem:[#allocation2 + $0x38] sm:$0xff] %vm2247_vm0, %v1274_v1  ;;  %v152_v9 = vld [vmem:[%s2217_s2 + $0x30] sm:$0xff]  ;;  %v155_v10 = vld [vmem:[%s2217_s2 + $0x48] sm:$0xff] }
  0x18   :  { %116 = vst.msk [vmem:[#allocation2 + $0x40] sm:$0xff] %vm2247_vm0, %v1274_v1  ;;  %117 = vst.msk [vmem:[#allocation2 + $0x48] sm:$0xff] %vm2247_vm0, %v1274_v1  ;;  %v154_v11 = vld [vmem:[%s2217_s2 + $0x40] sm:$0xff]  ;;  %v157_v12 = vld [vmem:[%s2217_s2 + $0x58] sm:$0xff] }
  0x19   :  { %118 = vst.msk [vmem:[#allocation2 + $0x50] sm:$0xff] %vm2247_vm0, %v1274_v1  ;;  %119 = vst.msk [vmem:[#allocation2 + $0x58] sm:$0xff] %vm2247_vm0, %v1274_v1  ;;  %201 = vperm.xlu1 %1107, %v149_v4   ;;  %191 = vperm.xlu0 %1106, %v147_v5   ;;  %v156_v13 = vld [vmem:[%s2217_s2 + $0x50] sm:$0xff]  ;;  %v159_v14 = vld [vmem:[%s2217_s2 + $0x68] sm:$0xff] }
  0x1a   :  { %120 = vst.msk [vmem:[#allocation2 + $0x60] sm:$0xff] %vm2247_vm0, %v1274_v1  ;;  %121 = vst.msk [vmem:[#allocation2 + $0x68] sm:$0xff] %vm2247_vm0, %v1274_v1  ;;  %v158_v15 = vld [vmem:[%s2217_s2 + $0x60] sm:$0xff]  ;;  %v161_v16 = vld [vmem:[%s2217_s2 + $0x78] sm:$0xff] }
  0x1b   :  { %122 = vst.msk [vmem:[#allocation2 + $0x70] sm:$0xff] %vm2247_vm0, %v1274_v1  ;;  %123 = vst.msk [vmem:[#allocation2 + $0x78] sm:$0xff] %vm2247_vm0, %v1274_v1  ;;  %v160_v17 = vld [vmem:[%s2217_s2 + $0x70] sm:$0xff]  ;;  %v163_v18 = vld [vmem:[%s2217_s2 + $0x88] sm:$0xff] }
  0x1c   :  { %124 = vst.msk [vmem:[#allocation2 + $0x80] sm:$0xff] %vm2247_vm0, %v1274_v1  ;;  %125 = vst.msk [vmem:[#allocation2 + $0x88] sm:$0xff] %vm2247_vm0, %v1274_v1  ;;  %v162_v19 = vld [vmem:[%s2217_s2 + $0x80] sm:$0xff]  ;;  %v1384_v20 = vld [vmem:[%s2215_s0 + $0x10] sm:$0xff] }
  0x1d   :  { %126 = vst.msk [vmem:[#allocation2 + $0x90] sm:$0xff] %vm2247_vm0, %v1274_v1  ;;  %211 = vperm.xlu1 %1107, %v151_v6   ;;  %206 = vperm.xlu0 %1106, %v150_v7   ;;  %v164_v21 = vld [vmem:[%s2217_s2 + $0x90] sm:$0xff]  ;;  %v300_v22 = vand.u32 2147483647, %v1384_v20  ;;  %v1393_v23 = vld [vmem:[%s2215_s0] sm:$0xff]  ;;  %v1398_v24 = vld [vmem:[%s2215_s0 + $0x18] sm:$0xff] }
  0x1e   :  { %2282 = vst [vmem:[#allocation9_spill] sm:$0xff] %v1393_v23  ;;  %v298_v26 = vand.u32 2147483647, %v1393_v23  ;;  %v1404_v27 = vld [vmem:[%s2215_s0 + $0x8] sm:$0xff]  ;;  %v301_v29 = vand.u32 2147483647, %v1398_v24 }
  0x1f   :  { %v319_v25 = vsub.f32 0.0, %v300_v22  ;;  %v1409_v28 = vld [vmem:[%s2215_s0 + $0x28] sm:$0xff]  ;;  %v299_v30 = vand.u32 2147483647, %v1404_v27  ;;  %v1417_v34 = vld [vmem:[%s2215_s0 + $0x20] sm:$0xff]  ;;  %v1422_v37 = vld [vmem:[%s2215_s0 + $0x38] sm:$0xff] }
  0x20   :  { %v317_v32 = vsub.f32 0.0, %v298_v26  ;;  %v303_v33 = vand.u32 2147483647, %v1409_v28  ;;  %2283 = vst [vmem:[#allocation10_spill] sm:$0xff] %v1417_v34  ;;  %v320_v35 = vsub.f32 0.0, %v301_v29  ;;  %2284 = vst [vmem:[#allocation11_spill] sm:$0xff] %v1422_v37 }
  0x21   :  { %221 = vperm.xlu1 %1107, %v153_v8   ;;  %216 = vperm.xlu0 %1106, %v152_v9   ;;  %v340_v31 = vmul.f32 1.442695, %v319_v25  ;;  %v318_v36 = vsub.f32 0.0, %v299_v30  ;;  %v302_v40 = vand.u32 2147483647, %v1417_v34  ;;  %v1428_v41 = vld [vmem:[%s2215_s0 + $0x30] sm:$0xff] }
  0x22   :  { %v336_v38 = vmul.f32 1.442695, %v317_v32  ;;  %v322_v39 = vsub.f32 0.0, %v303_v33  ;;  %2285 = vst [vmem:[#allocation12_spill] sm:$0xff] %v1428_v41  ;;  %v342_v42 = vmul.f32 1.442695, %v320_v35 }
  0x23   :  { %1108 = vpow2.f32 %v340_v31  ;;  %v305_v43 = vand.u32 2147483647, %v1422_v37  ;;  %v338_v44 = vmul.f32 1.442695, %v318_v36  ;;  %v321_v46 = vsub.f32 0.0, %v302_v40  ;;  %v1435_v48 = vld [vmem:[%s2215_s0 + $0x48] sm:$0xff] }
  0x24   :  { %1110 = vpow2.f32 %v336_v38  ;;  %v346_v45 = vmul.f32 1.442695, %v322_v39  ;;  %v304_v47 = vand.u32 2147483647, %v1428_v41  ;;  %2286 = vst [vmem:[#allocation13_spill] sm:$0xff] %v1435_v48  ;;  %v1446_v60 = vld [vmem:[%s2215_s0 + $0x40] sm:$0xff] }
  0x25   :  { %231 = vperm.xlu1 %1107, %v155_v10   ;;  %226 = vperm.xlu0 %1106, %v154_v11   ;;  %1112 = vpow2.f32 %v342_v42  ;;  %v324_v49 = vsub.f32 0.0, %v305_v43  ;;  %v344_v50 = vmul.f32 1.442695, %v321_v46  ;;  %v307_v52 = vand.u32 2147483647, %v1435_v48  ;;  %2287 = vst [vmem:[#allocation14_spill] sm:$0xff] %v1446_v60 }
  0x26   :  { %1114 = vpow2.f32 %v338_v44  ;;  %v323_v51 = vsub.f32 0.0, %v304_v47  ;;  %v306_v7 = vand.u32 2147483647, %v1446_v60  ;;  %v2289_v35 = vmov 0  ;;  %v1503_v46 = vld [vmem:[%s2215_s0 + $0x50] sm:$0xff] }
  0x27   :  { %1116 = vpow2.f32 %v346_v45  ;;  %v350_v54 = vmul.f32 1.442695, %v324_v49  ;;  %v326_v56 = vsub.f32 0.0, %v307_v52  ;;  %vm680_vm2 = vcmp.ge.f32.partialorder %v1384_v20, 0.0  ;;  %v1568_v11 = vld [vmem:[%s2215_s0 + $0x70] sm:$0xff] }
  0x28   :  { %1118 = vpow2.f32 %v344_v50  ;;  %v348_v55 = vmul.f32 1.442695, %v323_v51  ;;  %v325_v25 = vsub.f32 0.0, %v306_v7  ;;  %vm678_vm4 = vcmp.ge.f32.partialorder %v1393_v23, 0.0 }
  0x29   :  { %241 = vperm.xlu1 %1107, %v157_v12   ;;  %236 = vperm.xlu0 %1106, %v156_v13   ;;  %1120 = vpow2.f32 %v350_v54  ;;  %v354_v6 = vmul.f32 1.442695, %v326_v56  ;;  %v1468_v12 = vld [vmem:[%s2215_s0 + $0x58] sm:$0xff]  ;;  %v2293_v54 = vmov 0  ;;  %vm681_vm6 = vcmp.ge.f32.partialorder %v1398_v24, 0.0 }
  0x2a   :  { %v309_v26 = vand.u32 2147483647, %v1468_v12  ;;  %vm679_vm8 = vcmp.ge.f32.partialorder %v1404_v27, 0.0  ;;  %vm683_vm10 = vcmp.ge.f32.partialorder %v1409_v28, 0.0  ;;  %vm682_vm12 = vcmp.ge.f32.partialorder %v1417_v34, 0.0 }
  0x2b   :  { %vm685_vm14 = vcmp.ge.f32.partialorder %v1422_v37, 0.0  ;;  %vm684_vm15 = vcmp.ge.f32.partialorder %v1428_v41, 0.0 }
  0x2d   :  { %251 = vperm.xlu1 %1107, %v159_v14   ;;  %246 = vperm.xlu0 %1106, %v158_v15   ;;  %v1438_v53 = vpop.eup %1108 }
  0x2e   :  { %v449_v58 = vadd.f32 1.0, %v1438_v53  ;;  %v1448_v61 = vpop.eup %1110  ;;  %v452_v62 = vmul.f32 -0.5, %v1438_v53  ;;  %v455_v15 = vand.u32 2147483647, %v1438_v53 }
  0x2f   :  { %v1456_v4 = vpop.eup %1112  ;;  %v434_v5 = vmul.f32 -0.5, %v1448_v61  ;;  %v431_v9 = vadd.f32 1.0, %v1448_v61  ;;  %v437_v29 = vand.u32 2147483647, %v1448_v61 }
  0x30   :  { %1122 = vlog2.f32 %v449_v58  ;;  %v1460_v8 = vpop.eup %1114  ;;  %v461_v10 = vmul.f32 -0.5, %v1456_v4  ;;  %v453_v14 = vadd.f32 1.0, %v452_v62  ;;  %vm1486_vm1 = vcmp.lt.f32.partialorder %v455_v15, 0.0004427343  ;;  %v1524_v62 = vld [vmem:[%s2215_s0 + $0x68] sm:$0xff] }
  0x31   :  { %261 = vperm.xlu1 %1107, %v161_v16   ;;  %256 = vperm.xlu0 %1106, %v160_v17   ;;  %1124 = vpow2.f32 %v348_v55  ;;  %v1470_v13 = vpop.eup %1116  ;;  %v443_v16 = vmul.f32 -0.5, %v1460_v8  ;;  %v435_v22 = vadd.f32 1.0, %v434_v5  ;;  %v440_v31 = vadd.f32 1.0, %v1460_v8 }
  0x32   :  { %1126 = vrcp.f32 %v449_v58  ;;  %v462_v30 = vadd.f32 1.0, %v461_v10  ;;  %v1481_v32 = vpop.eup %1118  ;;  %v1484_v33 = vmul.f32 %v1438_v53, %v453_v14  ;;  %v2290_v35 = vsel %vm1486_vm1, 4294967295, %v2289_v35 }
  0x33   :  { %1128 = vlog2.f32 %v431_v9  ;;  %2291 = vst [vmem:[#allocation16_spill] sm:$0xff] %v2290_v35  ;;  %v444_v36 = vadd.f32 1.0, %v443_v16  ;;  %v464_v38 = vand.u32 2147483647, %v1456_v4  ;;  %v470_v40 = vmul.f32 -0.5, %v1481_v32  ;;  %v1493_v42 = vpop.eup %1120 }
  0x34   :  { %1130 = vpow2.f32 %v354_v6  ;;  %2288 = vst [vmem:[#allocation15_spill] sm:$0xff] %v1484_v33  ;;  %v1496_v43 = vmul.f32 %v1448_v61, %v435_v22  ;;  %v446_v44 = vand.u32 2147483647, %v1460_v8  ;;  %v476_v45 = vadd.f32 1.0, %v1470_v13 }
  0x35   :  { %271 = vperm.xlu1 %1107, %v163_v18   ;;  %266 = vperm.xlu0 %1106, %v162_v19   ;;  %v458_v18 = vadd.f32 1.0, %v1456_v4  ;;  %v479_v19 = vmul.f32 -0.5, %v1470_v13  ;;  %1132 = vrcp.f32 %v431_v9  ;;  %v1506_v49 = vmul.f32 %v1456_v4, %v462_v30 }
  0x36   :  { %2292 = vst [vmem:[#allocation17_spill] sm:$0xff] %v1496_v43  ;;  %v482_v50 = vand.u32 2147483647, %v1470_v13  ;;  %v497_v51 = vmul.f32 -0.5, %v1493_v42  ;;  %vm1512_vm3 = vcmp.lt.f32.partialorder %v437_v29, 0.0004427343  ;;  %v1517_v55 = vmul.f32 %v1460_v8, %v444_v36 }
  0x37   :  { %1134 = vlog2.f32 %v458_v18  ;;  %v480_v39 = vadd.f32 1.0, %v479_v19  ;;  %v2294_v54 = vsel %vm1512_vm3, 4294967295, %v2293_v54  ;;  %v467_v56 = vadd.f32 1.0, %v1481_v32 }
  0x38   :  { %1136 = vrcp.f32 %v458_v18  ;;  %2295 = vst [vmem:[#allocation18_spill] sm:$0xff] %v2294_v54  ;;  %v473_v58 = vand.u32 2147483647, %v1481_v32  ;;  %v471_v7 = vadd.f32 1.0, %v470_v40  ;;  %v494_v9 = vadd.f32 1.0, %v1493_v42  ;;  %v1538_v18 = vld [vmem:[%s2215_s0 + $0x60] sm:$0xff] }
  0x39   :  { %276 = vperm.xlu0 %1106, %v164_v21   ;;  %1138 = vlog2.f32 %v440_v31  ;;  %v1528_v6 = vmul.f32 %v1470_v13, %v480_v39  ;;  %v308_v10 = vand.u32 2147483647, %v1503_v46  ;;  %v328_v16 = vsub.f32 0.0, %v309_v26  ;;  %v1549_v40 = vld [vmem:[%s2215_s0 + $0x78] sm:$0xff] }
  0x3a   :  { %v1123_v47 = vpop.eup %1122  ;;  %1140 = vrcp.f32 %v440_v31  ;;  %v498_v22 = vadd.f32 1.0, %v497_v51  ;;  %v352_v29 = vmul.f32 1.442695, %v325_v25  ;;  %v311_v30 = vand.u32 2147483647, %v1524_v62 }
  0x3b   :  { %v1510_v52 = vpop.eup %1124  ;;  %1142 = vlog2.f32 %v476_v45  ;;  %2296 = vst [vmem:[#allocation19_spill] sm:$0xff] %v1528_v6  ;;  %v1532_v14 = vmul.f32 0.6931472, %v1123_v47  ;;  %vm1551_vm5 = vcmp.lt.f32.partialorder %v464_v38, 0.0004427343  ;;  %v1556_v25 = vmul.f32 %v1481_v32, %v471_v7  ;;  %v924_v47 = vld [vmem:[#allocation2 + $0x18] sm:$0xff] }
  0x3c   :  { %v1127_v5 = vpop.eup %1126  ;;  %1144 = vrcp.f32 %v476_v45  ;;  %v485_v39 = vadd.f32 1.0, %v1510_v52  ;;  %v488_v26 = vmul.f32 -0.5, %v1510_v52  ;;  %v310_v51 = vand.u32 2147483647, %v1538_v18 }
  0x3d   :  { %2297 = vst [vmem:[#allocation20_spill] sm:$0xff] %v1532_v14  ;;  %v1129_v19 = vpop.eup %1128  ;;  %1146 = vlog2.f32 %v467_v56  ;;  %v699_v36 = vmul.f32 %v1127_v5, %v1438_v53  ;;  %2300 = vst [vmem:[#allocation21_spill] sm:$0xff] %v1556_v25  ;;  %v327_v53 = vsub.f32 0.0, %v308_v10  ;;  %v358_v38 = vmul.f32 1.442695, %v328_v16 }
  0x3e   :  { %v1541_v31 = vpop.eup %1130  ;;  %1148 = vrcp.f32 %v467_v56  ;;  %v1563_v17 = vmul.f32 0.6931472, %v1129_v19  ;;  %vm1573_vm7 = vcmp.lt.f32.partialorder %v446_v44, 0.0004427343  ;;  %v1579_v19 = vmul.f32 %v1493_v42, %v498_v22  ;;  %v1594_v22 = vld [vmem:[%s2215_s0 + $0x88] sm:$0xff] }
  0x3f   :  { %v1133_v45 = vpop.eup %1132  ;;  %1150 = vlog2.f32 %v494_v9  ;;  %v313_v16 = vand.u32 2147483647, %v1549_v40  ;;  %v1584_v2 = vsel %vm680_vm2, %v1127_v5, %v699_v36  ;;  %vm1587_vm9 = vcmp.lt.f32.partialorder %v482_v50, 0.0004427343 }
  0x40   :  { %2301 = vst [vmem:[#allocation22_spill] sm:$0xff] %v1563_v17  ;;  %1152 = vrcp.f32 %v494_v9  ;;  %2304 = vst [vmem:[#allocation23_spill] sm:$0xff] %v1579_v19  ;;  %v330_v9 = vsub.f32 0.0, %v311_v30  ;;  %v697_v1 = vmul.f32 %v1133_v45, %v1448_v61  ;;  %v2305_v44 = vmov 0 }
  0x41   :  { %v1135_v56 = vpop.eup %1134  ;;  %1154 = vpow2.f32 %v352_v29  ;;  %v2306_v44 = vsel %vm1587_vm9, 4294967295, %v2305_v44  ;;  %v489_v0 = vadd.f32 1.0, %v488_v26  ;;  %v356_v30 = vmul.f32 1.442695, %v327_v53  ;;  %v1604_v26 = vld [vmem:[%s2215_s0 + $0x80] sm:$0xff] }
  0x42   :  { %v1570_v7 = vpop.eup %1136  ;;  %2307 = vst [vmem:[#allocation24_spill] sm:$0xff] %v2306_v44  ;;  %1156 = vlog2.f32 %v485_v39  ;;  %v329_v63 = vsub.f32 0.0, %v310_v51  ;;  %v312_v5 = vand.u32 2147483647, %v1568_v11  ;;  %v1597_v21 = vmul.f32 0.6931472, %v1135_v56 }
  0x43   :  { %v1139_v3 = vpop.eup %1138  ;;  %1158 = vrcp.f32 %v485_v39  ;;  %v491_v61 = vand.u32 2147483647, %v1510_v52  ;;  %v512_v50 = vadd.f32 1.0, %v1541_v31  ;;  %v362_v53 = vmul.f32 1.442695, %v330_v9 }
  0x44   :  { %v1141_v29 = vpop.eup %1140  ;;  %1160 = vpow2.f32 %v358_v38  ;;  %v332_v51 = vsub.f32 0.0, %v313_v16  ;;  %v315_v56 = vand.u32 2147483647, %v1594_v22  ;;  %v1614_v38 = vsel %vm678_vm4, %v1133_v45, %v697_v1 }
  0x45   :  { %v1143_v36 = vpop.eup %1142  ;;  %2308 = vst [vmem:[#allocation25_spill] sm:$0xff] %v1614_v38  ;;  %v700_v57 = vmul.f32 %v1570_v7, %v1456_v4  ;;  %vm1620_vm11 = vcmp.lt.f32.partialorder %v473_v58, 0.0004427343  ;;  %v2309_v15 = vmov 0  ;;  %1162 = vlog2.f32 %v512_v50  ;;  %v1630_v4 = vld [vmem:[%s2215_s0 + $0x90] sm:$0xff]  ;;  %s1275_s0 = smov [#allocation6]  }
  0x46   :  { %v1145_v59 = vpop.eup %1144  ;;  %v2310_v15 = vsel %vm1620_vm11, 4294967295, %v2309_v15  ;;  %v515_v9 = vmul.f32 -0.5, %v1541_v31  ;;  %1164 = vpow2.f32 %v356_v30  ;;  %v360_v39 = vmul.f32 1.442695, %v329_v63  ;;  %s1075_s16 = sshll.u32 %s1275_s0, 4  ;;  %s1076_s16 = int_to_ptr.vmem [resolvable:$true] %s1075_s16 }
  0x47   :  { %2311 = vst [vmem:[#allocation26_spill] sm:$0xff] %v2310_v15  ;;  %v1147_v16 = vpop.eup %1146  ;;  %v331_v17 = vsub.f32 0.0, %v312_v5  ;;  %v314_v1 = vand.u32 2147483647, %v1604_v26  ;;  %v1632_v45 = vmul.f32 0.6931472, %v1139_v3  ;;  %v698_v43 = vmul.f32 %v1141_v29, %v1460_v8  ;;  %p1249_p9 = scmp.lt.s32.totalorder %s1076_s16, %s1076_s16 }
  0x48   :  { %v1149_v58 = vpop.eup %1148  ;;  %v2313_v54 = vand.u32 2147483647, %v1493_v42  ;;  %v2314_v14 = vmov 0  ;;  %v518_v63 = vand.u32 2147483647, %v1541_v31  ;;  %1166 = vrcp.f32 %v512_v50  ;;  %s1244_s18 = scalar_lea.vmem %s1076_s16, 128 }
  0x49   :  { %2312 = vst [vmem:[#allocation27_spill] sm:$0xff] %v1632_v45  ;;  %v1151_v30 = vpop.eup %1150  ;;  %v1643_v5 = vmul.f32 0.6931472, %v1143_v36  ;;  %1168 = vpow2.f32 %v362_v53  ;;  %v366_v33 = vmul.f32 1.442695, %v332_v51  ;;  %v334_v3 = vsub.f32 0.0, %v315_v56  ;;  %p1245_p8 = scmp.ne.s32.totalorder %s1076_s16, %s1244_s18  ;;  %p1250_p10 = scmp.lt.s32.totalorder %s1244_s18, %s1244_s18 }
  0x4a   :  { %vm1637_vm13 = vcmp.lt.f32.partialorder %v2313_v54, 0.0004427343  ;;  %v1153_v35 = vpop.eup %1152  ;;  %v1650_v54 = vmul.f32 %v1510_v52, %v489_v0  ;;  %v516_v38 = vadd.f32 1.0, %v515_v9  ;;  %v316_v50 = vand.u32 2147483647, %v1630_v4 }
  0x4b   :  { %v2315_v14 = vsel %vm1637_vm13, 4294967295, %v2314_v14  ;;  %2317 = vst [vmem:[#allocation29_spill] sm:$0xff] %v1643_v5  ;;  %v1654_v23 = vpop.eup %1154  ;;  %vm1656_vm2 = vcmp.lt.f32.partialorder %v491_v61, 0.0004427343  ;;  %v2319_v36 = vmov 0  ;;  %1170 = vpow2.f32 %v360_v39  ;;  %p1251_p11 = por %p1250_p10, %p1249_p9 }
  0x4c   :  { %2316 = vst [vmem:[#allocation28_spill] sm:$0xff] %v2315_v14  ;;  %2318 = vst [vmem:[#allocation30_spill] sm:$0xff] %v1650_v54  ;;  %v2320_v36 = vsel %vm1656_vm2, 4294967295, %v2319_v36  ;;  %v364_v53 = vmul.f32 1.442695, %v331_v17  ;;  %v333_v51 = vsub.f32 0.0, %v314_v1  ;;  %v1157_v56 = vpop.eup %1156  ;;  %v1663_v0 = vsel %vm681_vm6, %v1570_v7, %v700_v57 }
  0x4d   :  { %2321 = vst [vmem:[#allocation31_spill] sm:$0xff] %v2320_v36  ;;  %v1671_v61 = vsel %vm679_vm8, %v1141_v29, %v698_v43  ;;  %v702_v8 = vmul.f32 %v1145_v59, %v1470_v13  ;;  %v1159_v39 = vpop.eup %1158  ;;  %v1678_v1 = vmul.f32 0.6931472, %v1147_v16  ;;  %vm1680_vm4 = vcmp.lt.f32.partialorder %v518_v63, 0.0004427343  ;;  %p1252_p12 = pnand %p1251_p11, %p1245_p8 }
  0x4e   :  { %v2323_v57 = vmov 0  ;;  %1172 = vpow2.f32 %v366_v33  ;;  %v370_v7 = vmul.f32 1.442695, %v334_v3  ;;  %v1684_v9 = vpop.eup %1160  ;;  %v701_v43 = vmul.f32 %v1149_v58, %v1481_v32 }
  0x4f   :  { %2322 = vst [vmem:[#allocation32_spill] sm:$0xff] %v1678_v1  ;;  %v2324_v57 = vsel %vm1680_vm4, 4294967295, %v2323_v57  ;;  %v1688_v13 = vmul.f32 %v1541_v31, %v516_v38  ;;  %vm687_vm6 = vcmp.ge.f32.partialorder %v1435_v48, 0.0  ;;  %v503_v29 = vadd.f32 1.0, %v1654_v23  ;;  %v1163_v33 = vpop.eup %1162 }
  0x50   :  { %2325 = vst [vmem:[#allocation33_spill] sm:$0xff] %v2324_v57  ;;  %v335_v17 = vsub.f32 0.0, %v316_v50  ;;  %v1692_v16 = vmul.f32 0.6931472, %v1151_v30  ;;  %v704_v63 = vmul.f32 %v1153_v35, %v1493_v42  ;;  %1174 = vpow2.f32 %v364_v53  ;;  %v1702_v6 = vpop.eup %1164 }
  0x51   :  { %2326 = vst [vmem:[#allocation34_spill] sm:$0xff] %v1688_v13  ;;  %v368_v5 = vmul.f32 1.442695, %v333_v51  ;;  %v1697_v3 = vsel %vm683_vm10, %v1145_v59, %v702_v8  ;;  %v1699_v32 = vmul.f32 0.6931472, %v1157_v56  ;;  %1176 = vlog2.f32 %v503_v29 }
  0x52   :  { %2327 = vst [vmem:[#allocation35_spill] sm:$0xff] %v1692_v16  ;;  %v703_v42 = vmul.f32 %v1159_v39, %v1510_v52  ;;  %v530_v50 = vadd.f32 1.0, %v1684_v9  ;;  %1178 = vpow2.f32 %v370_v7  ;;  %v1167_v53 = vpop.eup %1166  ;;  %v1712_v59 = vsel %vm682_vm12, %v1149_v58, %v701_v43 }
  0x53   :  { %2328 = vst [vmem:[#allocation36_spill] sm:$0xff] %v1699_v32  ;;  %2329 = vst [vmem:[#allocation37_spill] sm:$0xff] %v1712_v59  ;;  %1180 = vrcp.f32 %v503_v29  ;;  %v372_v51 = vmul.f32 1.442695, %v335_v17  ;;  %v1715_v56 = vpop.eup %1168  ;;  %v1723_v52 = vsel %vm685_vm14, %v1153_v35, %v704_v63  ;;  %v506_v7 = vmul.f32 -0.5, %v1654_v23 }
  0x54   :  { %2330 = vst [vmem:[#allocation38_spill] sm:$0xff] %v1723_v52  ;;  %1182 = vpow2.f32 %v368_v5  ;;  %v1730_v17 = vmul.f32 0.6931472, %v1163_v33  ;;  %v521_v43 = vadd.f32 1.0, %v1702_v6  ;;  %v1737_v8 = vsel %vm684_vm15, %v1159_v39, %v703_v42 }
  0x55   :  { %1184 = vlog2.f32 %v530_v50  ;;  %v1733_v29 = vpop.eup %1170  ;;  %2332 = vst [vmem:[#allocation40_spill] sm:$0xff] %v1737_v8  ;;  %v706_v35 = vmul.f32 %v1167_v53, %v1541_v31  ;;  %v509_v63 = vand.u32 2147483647, %v1654_v23  ;;  %v533_v58 = vmul.f32 -0.5, %v1684_v9 }
  0x56   :  { %2331 = vst [vmem:[#allocation39_spill] sm:$0xff] %v1730_v17  ;;  %1186 = vrcp.f32 %v530_v50  ;;  %v548_v33 = vadd.f32 1.0, %v1715_v56  ;;  %v507_v30 = vadd.f32 1.0, %v506_v7  ;;  %v524_v42 = vmul.f32 -0.5, %v1702_v6 }
  0x57   :  { %1188 = vpow2.f32 %v372_v51  ;;  %v539_v50 = vadd.f32 1.0, %v1733_v29  ;;  %v1758_v51 = vsel %vm687_vm6, %v1167_v53, %v706_v35  ;;  %v536_v7 = vand.u32 2147483647, %v1684_v9 }
  0x58   :  { %v1744_v38 = vpop.eup %1172  ;;  %1190 = vlog2.f32 %v521_v43  ;;  %2333 = vst [vmem:[#allocation41_spill] sm:$0xff] %v1758_v51  ;;  %vm1762_vm8 = vcmp.lt.f32.partialorder %v509_v63, 0.0004427343  ;;  %v2334_v57 = vmov 0  ;;  %v534_v31 = vadd.f32 1.0, %v533_v58 }
  0x59   :  { %1192 = vrcp.f32 %v521_v43  ;;  %v2335_v57 = vsel %vm1762_vm8, 4294967295, %v2334_v57  ;;  %v566_v43 = vadd.f32 1.0, %v1744_v38  ;;  %v1770_v13 = vmul.f32 %v1654_v23, %v507_v30 }
  0x5a   :  { %v1754_v5 = vpop.eup %1174  ;;  %1194 = vlog2.f32 %v548_v33  ;;  %2336 = vst [vmem:[#allocation42_spill] sm:$0xff] %v2335_v57  ;;  %v861_v35 = vlaneseq  ;;  %v525_v63 = vadd.f32 1.0, %v524_v42  ;;  %v527_v58 = vand.u32 2147483647, %v1702_v6 }
  0x5b   :  { %v1177_v32 = vpop.eup %1176  ;;  %1196 = vrcp.f32 %v548_v33  ;;  %2337 = vst [vmem:[#allocation43_spill] sm:$0xff] %v1770_v13  ;;  %v557_v33 = vadd.f32 1.0, %v1754_v5  ;;  %vm1779_vm14 = vcmp.lt.f32.partialorder %v536_v7, 0.0004427343  ;;  %v2338_v30 = vmov 0 }
  0x5c   :  { %v1767_v17 = vpop.eup %1178  ;;  %1198 = vlog2.f32 %v539_v50  ;;  %v2339_v30 = vsel %vm1779_vm14, 4294967295, %v2338_v30  ;;  %v551_v48 = vmul.f32 -0.5, %v1715_v56  ;;  %v1786_v36 = vmul.f32 %v1684_v9, %v534_v31 }
  0x5d   :  { %v1181_v39 = vpop.eup %1180  ;;  %1200 = vrcp.f32 %v539_v50  ;;  %2340 = vst [vmem:[#allocation44_spill] sm:$0xff] %v2339_v30  ;;  %v542_v42 = vmul.f32 -0.5, %v1733_v29  ;;  %v584_v50 = vadd.f32 1.0, %v1767_v17  ;;  %v554_v7 = vand.u32 2147483647, %v1715_v56 }
  0x5e   :  { %v1777_v51 = vpop.eup %1182  ;;  %1202 = vlog2.f32 %v566_v43  ;;  %2341 = vst [vmem:[#allocation45_spill] sm:$0xff] %v1786_v36  ;;  %v1791_v19 = vshrl.u32 %v861_v35, 7  ;;  %v1797_v53 = vmul.f32 %v1702_v6, %v525_v63  ;;  %vm1799_vm15 = vcmp.lt.f32.partialorder %v527_v58, 0.0004427343 }
  0x5f   :  { %v1185_v54 = vpop.eup %1184  ;;  %1204 = vrcp.f32 %v566_v43  ;;  %v569_v43 = vmul.f32 -0.5, %v1744_v38  ;;  %v575_v1 = vadd.f32 1.0, %v1777_v51  ;;  %v1805_v15 = vmul.f32 0.6931472, %v1177_v32 }
  0x60   :  { %v1187_v16 = vpop.eup %1186  ;;  %1206 = vlog2.f32 %v557_v33  ;;  %v552_v35 = vadd.f32 1.0, %v551_v48  ;;  %v545_v14 = vand.u32 2147483647, %v1733_v29  ;;  %v705_v58 = vmul.f32 %v1181_v39, %v1654_v23 }
  0x61   :  { %v1794_v8 = vpop.eup %1188  ;;  %1208 = vrcp.f32 %v557_v33  ;;  %2344 = vst [vmem:[#allocation46_spill] sm:$0xff] %v1805_v15  ;;  %v1810_v41 = vmul.f32 0.6931472, %v1185_v54  ;;  %v543_v52 = vadd.f32 1.0, %v542_v42  ;;  %v708_v33 = vmul.f32 %v1187_v16, %v1684_v9 }
  0x62   :  { %v1191_v25 = vpop.eup %1190  ;;  %1210 = vlog2.f32 %v584_v50  ;;  %v572_v32 = vand.u32 2147483647, %v1744_v38  ;;  %v593_v48 = vadd.f32 1.0, %v1794_v8  ;;  %v570_v59 = vadd.f32 1.0, %v569_v43 }
  0x63   :  { %v1193_v63 = vpop.eup %1192  ;;  %2345 = vst [vmem:[#allocation47_spill] sm:$0xff] %v1810_v41  ;;  %1212 = vrcp.f32 %v584_v50  ;;  %v560_v23 = vmul.f32 -0.5, %v1754_v5  ;;  %v587_v54 = vmul.f32 -0.5, %v1767_v17  ;;  %vm1824_vm0 = vcmp.lt.f32.partialorder %v554_v7, 0.0004427343 }
  0x64   :  { %v1195_v37 = vpop.eup %1194  ;;  %1214 = vlog2.f32 %v575_v1  ;;  %v2346_v50 = vmov 0  ;;  %vm1828_vm10 = vcmp.lt.f32.partialorder %v545_v14, 0.0004427343  ;;  %vm2350_vm12 = vcmp.ge.f32.partialorder %v1446_v60, 0.0 }
  0x65   :  { %v1197_v44 = vpop.eup %1196  ;;  %1216 = vrcp.f32 %v575_v1  ;;  %v2347_v50 = vsel %vm1824_vm0, 4294967295, %v2346_v50  ;;  %v1834_v45 = vsel %vm2350_vm12, %v1181_v39, %v705_v58  ;;  %v1837_v1 = vmul.f32 %v1715_v56, %v552_v35 }
  0x66   :  { %v1199_v42 = vpop.eup %1198  ;;  %1218 = vlog2.f32 %v593_v48  ;;  %2351 = vst [vmem:[#allocation48_spill] sm:$0xff] %v1834_v45  ;;  %v1840_v57 = vmul.f32 %v1733_v29, %v543_v52  ;;  %v563_v7 = vand.u32 2147483647, %v1754_v5  ;;  %vm2353_vm6 = vcmp.ge.f32.partialorder %v1468_v12, 0.0 }
  0x67   :  { %v1201_v43 = vpop.eup %1200  ;;  %2352 = vst [vmem:[#allocation49_spill] sm:$0xff] %v1837_v1  ;;  %v1849_v15 = vsel %vm2353_vm6, %v1187_v16, %v708_v33  ;;  %v1851_v39 = vmul.f32 0.6931472, %v1191_v25  ;;  %vm1853_vm12 = vcmp.lt.f32.partialorder %v572_v32, 0.0004427343  ;;  %v2356_v35 = vmov 0 }
  0x68   :  { %v1203_v9 = vpop.eup %1202  ;;  %2354 = vst [vmem:[#allocation50_spill] sm:$0xff] %v1849_v15  ;;  %v2357_v35 = vsel %vm1853_vm12, 4294967295, %v2356_v35  ;;  %v707_v58 = vmul.f32 %v1193_v63, %v1702_v6  ;;  %v1859_v13 = vmul.f32 %v1744_v38, %v570_v59  ;;  %v561_v45 = vadd.f32 1.0, %v560_v23 }
  0x69   :  { %2355 = vst [vmem:[#allocation51_spill] sm:$0xff] %v1851_v39  ;;  %2358 = vst [vmem:[#allocation52_spill] sm:$0xff] %v2357_v35  ;;  %v1205_v52 = vpop.eup %1204  ;;  %v588_v60 = vadd.f32 1.0, %v587_v54  ;;  %v1861_v14 = vmul.f32 0.6931472, %v1195_v37  ;;  %v578_v16 = vmul.f32 -0.5, %v1777_v51  ;;  %1220 = vrcp.f32 %v593_v48 }
  0x6a   :  { %2359 = vst [vmem:[#allocation53_spill] sm:$0xff] %v1859_v13  ;;  %v1207_v30 = vpop.eup %1206  ;;  %v590_v25 = vand.u32 2147483647, %v1767_v17  ;;  %v710_v6 = vmul.f32 %v1197_v44, %v1715_v56  ;;  %v1868_v32 = vmul.f32 0.6931472, %v1199_v42  ;;  %v2361_v59 = vmov 0 }
  0x6b   :  { %2360 = vst [vmem:[#allocation54_spill] sm:$0xff] %v1861_v14  ;;  %v1209_v33 = vpop.eup %1208  ;;  %vm1870_vm8 = vcmp.lt.f32.partialorder %v563_v7, 0.0004427343  ;;  %v596_v37 = vmul.f32 -0.5, %v1794_v8  ;;  %v709_v41 = vmul.f32 %v1201_v43, %v1733_v29  ;;  %v1880_v48 = vmul.f32 0.6931472, %v1203_v9 }
  0x6c   :  { %v2362_v59 = vsel %vm1870_vm8, 4294967295, %v2361_v59  ;;  %v1211_v23 = vpop.eup %1210  ;;  %v712_v56 = vmul.f32 %v1205_v52, %v1744_v38  ;;  %vm2365_vm6 = vcmp.ge.f32.partialorder %v1503_v46, 0.0  ;;  %v1888_v36 = vmul.f32 0.6931472, %v1207_v30  ;;  %v165_v39 = vld [vmem:[#allocation3] sm:$0xff] }
  0x6d   :  { %2363 = vst [vmem:[#allocation55_spill] sm:$0xff] %v2362_v59  ;;  %2364 = vst [vmem:[#allocation56_spill] sm:$0xff] %v1880_v48  ;;  %v1213_v42 = vpop.eup %1212  ;;  %v1886_v7 = vsel %vm2365_vm6, %v1193_v63, %v707_v58  ;;  %v1891_v15 = vmul.f32 %v1754_v5, %v561_v45  ;;  %v1894_v54 = vmul.f32 %v1767_v17, %v588_v60  ;;  %vm1900_vm14 = vcmp.lt.f32.partialorder %v590_v25, 0.0004427343  ;;  %v167_v45 = vld [vmem:[#allocation3 + $0x10] sm:$0xff] }
  0x6e   :  { %2366 = vst [vmem:[#allocation57_spill] sm:$0xff] %v1888_v36  ;;  %v1215_v29 = vpop.eup %1214  ;;  %v579_v63 = vadd.f32 1.0, %v578_v16  ;;  %v1905_v30 = vadd.s32 144, %v1791_v19  ;;  %vm2372_vm6 = vcmp.ge.f32.partialorder %v1524_v62, 0.0  ;;  %v581_v25 = vand.u32 2147483647, %v1777_v51 }
  0x6f   :  { %2367 = vst [vmem:[#allocation58_spill] sm:$0xff] %v1891_v15  ;;  %2368 = vst [vmem:[#allocation59_spill] sm:$0xff] %v1894_v54  ;;  %v1217_v58 = vpop.eup %1216  ;;  %v1909_v60 = vsel %vm2372_vm6, %v1197_v44, %v710_v6  ;;  %v597_v14 = vadd.f32 1.0, %v596_v37  ;;  %vm2373_vm0 = vcmp.ge.f32.partialorder %v1538_v18, 0.0  ;;  %vm2374_vm6 = vcmp.ge.f32.partialorder %v1549_v40, 0.0  ;;  %v166_v36 = vld [vmem:[#allocation3 + $0x8] sm:$0xff] }
  0x70   :  { %2371 = vst [vmem:[#allocation60_spill] sm:$0xff] %v1905_v30  ;;  %v1219_v1 = vpop.eup %1218  ;;  %v1918_v19 = vsel %vm2373_vm0, %v1201_v43, %v709_v41  ;;  %v1926_v44 = vsel %vm2374_vm6, %v1205_v52, %v712_v56  ;;  %v711_v6 = vmul.f32 %v1209_v33, %v1754_v5  ;;  %v1933_v41 = vmul.f32 0.6931472, %v1211_v23 }
  0x71   :  { %v714_v43 = vmul.f32 %v1213_v42, %v1767_v17  ;;  %v599_v35 = vand.u32 2147483647, %v1794_v8  ;;  %v1937_v13 = vmul.f32 0.6931472, %v1215_v29  ;;  %v1940_v52 = vmul.f32 %v1777_v51, %v579_v63 }
  0x72   :  { %2375 = vst [vmem:[#allocation61_spill] sm:$0xff] %v1933_v41  ;;  %vm1942_vm0 = vcmp.lt.f32.partialorder %v581_v25, 0.0004427343  ;;  %v2378_v5 = vmov 0  ;;  %v713_v56 = vmul.f32 %v1217_v58, %v1777_v51  ;;  %v1947_v37 = vmul.f32 0.6931472, %v1219_v1 }
  0x73   :  { %2376 = vst [vmem:[#allocation62_spill] sm:$0xff] %v1937_v13  ;;  %2377 = vst [vmem:[#allocation63_spill] sm:$0xff] %v1940_v52  ;;  %v2379_v5 = vsel %vm1942_vm0, 4294967295, %v2378_v5  ;;  %v1950_v23 = vmul.f32 %v1794_v8, %v597_v14  ;;  %v1952_v17 = vpop.eup %1220  ;;  %v168_v25 = vld [vmem:[#allocation3 + $0x18] sm:$0xff]  ;;  %vm2385_vm6 = vcmp.ge.f32.partialorder %v1568_v11, 0.0  ;;  %vm2386_vm8 = vcmp.ge.f32.partialorder %v1594_v22, 0.0 }
  0x74   :  { %2380 = vst [vmem:[#allocation64_spill] sm:$0xff] %v2379_v5  ;;  %2381 = vst [vmem:[#allocation65_spill] sm:$0xff] %v1947_v37  ;;  %v1960_v51 = vsel %vm2385_vm6, %v1209_v33, %v711_v6  ;;  %vm1970_vm12 = vcmp.lt.f32.partialorder %v599_v35, 0.0004427343  ;;  %v2387_v14 = vmov 0  ;;  %vm696_vm6 = vcmp.ge.f32.partialorder %v1630_v4, 0.0 }
  0x75   :  { %2382 = vst [vmem:[#allocation66_spill] sm:$0xff] %v1950_v23  ;;  %v2388_v14 = vsel %vm1970_vm12, 4294967295, %v2387_v14  ;;  %v921_v1 = vld [vmem:[#allocation2] sm:$0xff]  ;;  %v2402_v37 = vmax.f32 %v1404_v27, 0.0  ;;  %v172_v52 = vld [vmem:[#allocation3 + $0x38] sm:$0xff] }
  0x94   :  { %v197_v38 = vpop.permute.xlu1 %196  ;;  %v187_v30 = vpop.permute.xlu0 %186 }
  0x95   :  { %v281_v16 = vmul.f32 %v197_v38, %v167_v45  ;;  %v279_v48 = vmul.f32 %v187_v30, %v165_v39  ;;  %v2383_v38 = vld [vmem:[#allocation9_spill] sm:$0xff] }
  0x96   :  { %v2384_v30 = vld [vmem:[#allocation25_spill] sm:$0xff]  ;;  %2389 = vst [vmem:[#allocation9_spill] sm:$0xff] %v2388_v14  ;;  %v2391_v33 = vmax.f32 %v2383_v38, 0.0 }
  0x97   :  { %v395_v39 = vmul.f32 %v281_v16, %v1384_v20  ;;  %v737_v29 = vsub.f32 %v1584_v2, %v281_v16  ;;  %v393_v63 = vmul.f32 %v279_v48, %v2383_v38  ;;  %v735_v45 = vsub.f32 %v2384_v30, %v279_v48  ;;  %v2395_v38 = vld [vmem:[#allocation20_spill] sm:$0xff] }
  0x98   :  { %v202_v15 = vpop.permute.xlu1 %201  ;;  %v192_v59 = vpop.permute.xlu0 %191  ;;  %v1968_v2 = vsel %vm2386_vm8, %v1213_v42, %v714_v43  ;;  %v2390_v48 = vmax.f32 %v1384_v20, 0.0  ;;  %v170_v42 = vld [vmem:[#allocation3 + $0x28] sm:$0xff]  ;;  %v169_v43 = vld [vmem:[#allocation3 + $0x20] sm:$0xff]  ;;  %vm2392_vm8 = vcmp.ge.f32.partialorder %v1604_v26, 0.0  ;;  %v1989_v20 = vmul.f32 %v1952_v17, %v1794_v8  ;;  %v923_v8 = vld [vmem:[#allocation2 + $0x10] sm:$0xff] }
  0x99   :  { %v756_v30 = vmul.f32 %v737_v29, %v737_v29  ;;  %v412_v6 = vsub.f32 %v2391_v33, %v393_v63  ;;  %v282_v41 = vmul.f32 %v202_v15, %v168_v25  ;;  %v280_v54 = vmul.f32 %v192_v59, %v166_v36  ;;  %v2394_v29 = vld [vmem:[#allocation15_spill] sm:$0xff]  ;;  %v2398_v36 = vld [vmem:[#allocation17_spill] sm:$0xff]  ;;  %v2399_v59 = vld [vmem:[#allocation22_spill] sm:$0xff] }
  0x9a   :  { %v414_v16 = vsub.f32 %v2390_v48, %v395_v39  ;;  %v1984_v35 = vsel %vm2392_vm8, %v1217_v58, %v713_v56  ;;  %v2396_v63 = vsel %vm1486_vm1, %v2394_v29, %v2395_v38  ;;  %v2400_v25 = vsel %vm1512_vm3, %v2398_v36, %v2399_v59 }
  0x9b   :  { %v602_v33 = vadd.f32 %v2400_v25, %v412_v6  ;;  %v754_v58 = vmul.f32 %v735_v45, %v735_v45  ;;  %v396_v39 = vmul.f32 %v282_v41, %v1398_v24  ;;  %v738_v13 = vsub.f32 %v1663_v0, %v282_v41  ;;  %v171_v0 = vld [vmem:[#allocation3 + $0x30] sm:$0xff] }
  0x9c   :  { %v604_v48 = vadd.f32 %v2396_v63, %v414_v16  ;;  %v394_v16 = vmul.f32 %v280_v54, %v1404_v27  ;;  %v736_v29 = vsub.f32 %v1671_v61, %v280_v54  ;;  %v212_v38 = vpop.permute.xlu1 %211  ;;  %v207_v63 = vpop.permute.xlu0 %206  ;;  %v2401_v59 = vmax.f32 %v1398_v24, 0.0  ;;  %v2404_v27 = vld [vmem:[#allocation27_spill] sm:$0xff] }
  0x9d   :  { %v773_v6 = vmul.f32 %v754_v58, %v602_v33  ;;  %v284_v45 = vmul.f32 %v212_v38, %v170_v42  ;;  %v283_v36 = vmul.f32 %v207_v63, %v169_v43  ;;  %v757_v56 = vmul.f32 %v738_v13, %v738_v13  ;;  %v2406_v42 = vld [vmem:[#allocation10_spill] sm:$0xff] }
  0x9e   :  { %v775_v15 = vmul.f32 %v756_v30, %v604_v48  ;;  %v415_v25 = vsub.f32 %v2401_v59, %v396_v39  ;;  %v413_v23 = vsub.f32 %v2402_v37, %v394_v16  ;;  %v755_v14 = vmul.f32 %v736_v29, %v736_v29  ;;  %v2407_v48 = vld [vmem:[#allocation37_spill] sm:$0xff] }
  0x9f   :  { %v959_v5 = vadd.f32 %v921_v1, %v773_v6  ;;  %v398_v61 = vmul.f32 %v284_v45, %v1409_v28  ;;  %v740_v54 = vsub.f32 %v1697_v3, %v284_v45  ;;  %v2403_v30 = vsel %vm1551_vm5, %v1506_v49, %v1597_v21  ;;  %v922_v3 = vld [vmem:[#allocation2 + $0x8] sm:$0xff]  ;;  %v2414_v6 = vld [vmem:[#allocation29_spill] sm:$0xff] }
  0xa0   :  { %v961_v41 = vadd.f32 %v923_v8, %v775_v15  ;;  %v605_v24 = vadd.f32 %v2403_v30, %v415_v25  ;;  %v2405_v13 = vsel %vm1573_vm7, %v1517_v55, %v2404_v27  ;;  %v397_v43 = vmul.f32 %v283_v36, %v2406_v42  ;;  %v222_v33 = vpop.permute.xlu1 %221  ;;  %v217_v58 = vpop.permute.xlu0 %216  ;;  %v2413_v15 = vld [vmem:[#allocation19_spill] sm:$0xff]  ;;  %v2417_v25 = vld [vmem:[#allocation38_spill] sm:$0xff]  ;;  %v2421_v27 = vld [vmem:[#allocation32_spill] sm:$0xff] }
  0xa1   :  { %v603_v37 = vadd.f32 %v2405_v13, %v413_v23  ;;  %v739_v1 = vsub.f32 %v2407_v48, %v283_v36  ;;  %vm2408_vm1 = vcmask 654336   ;;  %v2410_v21 = vmax.f32 %v1409_v28, 0.0  ;;  %v2416_v36 = vld [vmem:[#allocation11_spill] sm:$0xff]  ;;  %v2438_v30 = vld [vmem:[#allocation14_spill] sm:$0xff] }
  0xa2   :  { %981 = vst.msk [vmem:[#allocation2 + $0x10] sm:$0xff] %vm2408_vm1, %v961_v41  ;;  %vm2409_vm3 = vmmov %vm2408_vm1  ;;  %v759_v10 = vmul.f32 %v740_v54, %v740_v54  ;;  %v286_v8 = vmul.f32 %v222_v33, %v172_v52  ;;  %v285_v39 = vmul.f32 %v217_v58, %v171_v0  ;;  %v776_v55 = vmul.f32 %v757_v56, %v605_v24  ;;  %v2418_v41 = vld [vmem:[#allocation12_spill] sm:$0xff]  ;;  %v174_v52 = vld [vmem:[#allocation3 + $0x48] sm:$0xff] }
  0xa3   :  { %979 = vst.msk [vmem:[#allocation2] sm:$0xff] %vm2409_vm3, %v959_v5  ;;  %v417_v49 = vsub.f32 %v2410_v21, %v398_v61  ;;  %v774_v23 = vmul.f32 %v755_v14, %v603_v37  ;;  %v2411_v16 = vmax.f32 %v2406_v42, 0.0  ;;  %v758_v38 = vmul.f32 %v739_v1, %v739_v1  ;;  %v173_v0 = vld [vmem:[#allocation3 + $0x40] sm:$0xff]  ;;  %v926_v54 = vld [vmem:[#allocation2 + $0x28] sm:$0xff]  ;;  %v2423_v42 = vld [vmem:[#allocation40_spill] sm:$0xff] }
  0xa4   :  { %v2415_v45 = vsel %vm1587_vm9, %v2413_v15, %v2414_v6  ;;  %v400_v59 = vmul.f32 %v286_v8, %v2416_v36  ;;  %v742_v28 = vsub.f32 %v2417_v25, %v286_v8  ;;  %v399_v61 = vmul.f32 %v285_v39, %v2418_v41  ;;  %v2420_v24 = vld [vmem:[#allocation21_spill] sm:$0xff]  ;;  %v232_v48 = vpop.permute.xlu1 %231  ;;  %v227_v1 = vpop.permute.xlu0 %226  ;;  %v925_v58 = vld [vmem:[#allocation2 + $0x20] sm:$0xff]  ;;  %vm2426_vm5 = vmmov %vm2408_vm1 }
  0xa5   :  { %v416_v29 = vsub.f32 %v2411_v16, %v397_v43  ;;  %v607_v5 = vadd.f32 %v2415_v45, %v417_v49  ;;  %v962_v56 = vadd.f32 %v924_v47, %v776_v55  ;;  %v960_v14 = vadd.f32 %v922_v3, %v774_v23  ;;  %vm2427_vm7 = vmmov %vm2408_vm1  ;;  %v176_v16 = vld [vmem:[#allocation3 + $0x58] sm:$0xff]  ;;  %v2429_v15 = vld [vmem:[#allocation23_spill] sm:$0xff] }
  0xa6   :  { %v2422_v13 = vsel %vm1620_vm11, %v2420_v24, %v2421_v27  ;;  %v741_v43 = vsub.f32 %v2423_v42, %v285_v39  ;;  %v2424_v21 = vmax.f32 %v2416_v36, 0.0  ;;  %v2425_v8 = vmax.f32 %v2418_v41, 0.0  ;;  %v2430_v6 = vld [vmem:[#allocation35_spill] sm:$0xff]  ;;  %vm2439_vm9 = vmmov %vm2408_vm1  ;;  %v2448_v36 = vld [vmem:[#allocation42_spill] sm:$0xff] }
  0xa7   :  { %v606_v37 = vadd.f32 %v2422_v13, %v416_v29  ;;  %v778_v33 = vmul.f32 %v759_v10, %v607_v5  ;;  %v2055_v3 = vsel %vm696_vm6, %v1952_v17, %v1989_v20  ;;  %982 = vst.msk [vmem:[#allocation2 + $0x18] sm:$0xff] %vm2426_vm5, %v962_v56  ;;  %v761_v55 = vmul.f32 %v742_v28, %v742_v28  ;;  %v2433_v17 = vld [vmem:[#allocation30_spill] sm:$0xff]  ;;  %v2434_v20 = vld [vmem:[#allocation36_spill] sm:$0xff]  ;;  %v928_v28 = vld [vmem:[#allocation2 + $0x38] sm:$0xff] }
  0xa8   :  { %v419_v49 = vsub.f32 %v2424_v21, %v400_v59  ;;  %v418_v47 = vsub.f32 %v2425_v8, %v399_v61  ;;  %980 = vst.msk [vmem:[#allocation2 + $0x8] sm:$0xff] %vm2427_vm7, %v960_v14  ;;  %v288_v10 = vmul.f32 %v232_v48, %v174_v52  ;;  %v287_v23 = vmul.f32 %v227_v1, %v173_v0  ;;  %v175_v61 = vld [vmem:[#allocation3 + $0x50] sm:$0xff]  ;;  %v927_v52 = vld [vmem:[#allocation2 + $0x30] sm:$0xff]  ;;  %v2436_v0 = vld [vmem:[#allocation13_spill] sm:$0xff]  ;;  %v242_v27 = vpop.permute.xlu1 %241  ;;  %v237_v13 = vpop.permute.xlu0 %236 }
  0xa9   :  { %v777_v39 = vmul.f32 %v758_v38, %v606_v37  ;;  %v964_v29 = vadd.f32 %v926_v54, %v778_v33  ;;  %v2431_v45 = vsel %vm1637_vm13, %v2429_v15, %v2430_v6  ;;  %v2435_v59 = vsel %vm1656_vm2, %v2433_v17, %v2434_v20  ;;  %v2437_v14 = vld [vmem:[#allocation41_spill] sm:$0xff]  ;;  %v2440_v48 = vld [vmem:[#allocation48_spill] sm:$0xff]  ;;  %vm2441_vm11 = vmmov %vm2408_vm1 }
  0xaa   :  { %v609_v5 = vadd.f32 %v2431_v45, %v419_v49  ;;  %v608_v25 = vadd.f32 %v2435_v59, %v418_v47  ;;  %v760_v41 = vmul.f32 %v741_v43, %v741_v43  ;;  %v402_v56 = vmul.f32 %v288_v10, %v2436_v0  ;;  %v2450_v17 = vld [vmem:[#allocation43_spill] sm:$0xff]  ;;  %v2451_v20 = vld [vmem:[#allocation46_spill] sm:$0xff]  ;;  %vm2454_vm2 = vmmov %vm2408_vm1 }
  0xab   :  { %v963_v38 = vadd.f32 %v925_v58, %v777_v39  ;;  %v744_v54 = vsub.f32 %v2437_v14, %v288_v10  ;;  %v401_v24 = vmul.f32 %v287_v23, %v2438_v30  ;;  %984 = vst.msk [vmem:[#allocation2 + $0x28] sm:$0xff] %vm2439_vm9, %v964_v29  ;;  %v743_v1 = vsub.f32 %v2440_v48, %v287_v23  ;;  %v178_v39 = vld [vmem:[#allocation3 + $0x68] sm:$0xff]  ;;  %v177_v10 = vld [vmem:[#allocation3 + $0x60] sm:$0xff]  ;;  %vm2455_vm8 = vmmov %vm2408_vm1 }
  0xac   :  { %v780_v37 = vmul.f32 %v761_v55, %v609_v5  ;;  %v779_v42 = vmul.f32 %v760_v41, %v608_v25  ;;  %v290_v33 = vmul.f32 %v242_v27, %v176_v16  ;;  %v2442_v43 = vmax.f32 %v2436_v0, 0.0  ;;  %v2445_v23 = vld [vmem:[#allocation34_spill] sm:$0xff]  ;;  %v2446_v16 = vld [vmem:[#allocation39_spill] sm:$0xff]  ;;  %vm2466_vm6 = vmmov %vm2408_vm1 }
  0xad   :  { %983 = vst.msk [vmem:[#allocation2 + $0x20] sm:$0xff] %vm2441_vm11, %v963_v38  ;;  %v763_v21 = vmul.f32 %v744_v54, %v744_v54  ;;  %v2443_v49 = vmax.f32 %v2438_v30, 0.0  ;;  %v289_v47 = vmul.f32 %v237_v13, %v175_v61  ;;  %v762_v29 = vmul.f32 %v743_v1, %v743_v1  ;;  %v2453_v41 = vld [vmem:[#allocation50_spill] sm:$0xff]  ;;  %v930_v0 = vld [vmem:[#allocation2 + $0x48] sm:$0xff]  ;;  %vm2472_vm3 = vmmov %vm2408_vm1 }
  0xae   :  { %v421_v58 = vsub.f32 %v2442_v43, %v402_v56  ;;  %v966_v63 = vadd.f32 %v928_v28, %v780_v37  ;;  %v965_v15 = vadd.f32 %v927_v52, %v779_v42  ;;  %v404_v55 = vmul.f32 %v290_v33, %v1468_v12  ;;  %v252_v28 = vpop.permute.xlu1 %251  ;;  %v247_v52 = vpop.permute.xlu0 %246  ;;  %v929_v56 = vld [vmem:[#allocation2 + $0x40] sm:$0xff]  ;;  %v2460_v43 = vld [vmem:[#allocation45_spill] sm:$0xff]  ;;  %vm2474_vm5 = vmmov %vm2408_vm1 }
  0xaf   :  { %v420_v8 = vsub.f32 %v2443_v49, %v401_v24  ;;  %v2447_v45 = vsel %vm1680_vm4, %v2445_v23, %v2446_v16  ;;  %vm2449_vm13 = vnez %v2448_v36  ;;  %v746_v61 = vsub.f32 %v2453_v41, %v290_v33  ;;  %v2458_v33 = vld [vmem:[#allocation44_spill] sm:$0xff]  ;;  %vm2475_vm7 = vmmov %vm2408_vm1 }
  0xb0   :  { %v611_v5 = vadd.f32 %v2447_v45, %v421_v58  ;;  %v2452_v59 = vsel %vm2449_vm13, %v2450_v17, %v2451_v20  ;;  %v403_v38 = vmul.f32 %v289_v47, %v1503_v46  ;;  %986 = vst.msk [vmem:[#allocation2 + $0x38] sm:$0xff] %vm2454_vm2, %v966_v63  ;;  %v2456_v14 = vmax.f32 %v1468_v12, 0.0  ;;  %v2461_v58 = vld [vmem:[#allocation47_spill] sm:$0xff]  ;;  %v1001_v45 = vld [vmem:[#allocation2] sm:$0xff]  ;;  %v931_v36 = vld [vmem:[#allocation2 + $0x50] sm:$0xff] }
  0xb1   :  { %v610_v25 = vadd.f32 %v2452_v59, %v420_v8  ;;  %985 = vst.msk [vmem:[#allocation2 + $0x30] sm:$0xff] %vm2455_vm8, %v965_v15  ;;  %v745_v30 = vsub.f32 %v1886_v7, %v289_v47  ;;  %v292_v24 = vmul.f32 %v252_v28, %v178_v39  ;;  %v291_v27 = vmul.f32 %v247_v52, %v177_v10  ;;  %v180_v7 = vld [vmem:[#allocation3 + $0x78] sm:$0xff]  ;;  %v179_v47 = vld [vmem:[#allocation3 + $0x70] sm:$0xff]  ;;  %v932_v10 = vld [vmem:[#allocation2 + $0x58] sm:$0xff] }
  0xb2   :  { %v423_v54 = vsub.f32 %v2456_v14, %v404_v55  ;;  %v782_v13 = vmul.f32 %v763_v21, %v611_v5  ;;  %v765_v42 = vmul.f32 %v746_v61, %v746_v61  ;;  %v2457_v48 = vmax.f32 %v1503_v46, 0.0  ;;  %v2463_v46 = vld [vmem:[#allocation51_spill] sm:$0xff]  ;;  %v262_v23 = vpop.permute.xlu1 %261  ;;  %v257_v16 = vpop.permute.xlu0 %256  ;;  %v2469_v52 = vld [vmem:[#allocation49_spill] sm:$0xff]  ;;  %vm2483_vm9 = vmmov %vm2408_vm1 }
  0xb3   :  { %v781_v37 = vmul.f32 %v762_v29, %v610_v25  ;;  %vm2459_vm4 = vnez %v2458_v33  ;;  %v764_v63 = vmul.f32 %v745_v30, %v745_v30  ;;  %v406_v12 = vmul.f32 %v292_v24, %v1524_v62  ;;  %vm2490_vm13 = vmmov %vm2408_vm1 }
  0xb4   :  { %v422_v1 = vsub.f32 %v2457_v48, %v403_v38  ;;  %v2462_v49 = vsel %vm2459_vm4, %v2460_v43, %v2461_v58  ;;  %v748_v15 = vsub.f32 %v1909_v60, %v292_v24  ;;  %v968_v39 = vadd.f32 %v930_v0, %v782_v13  ;;  %v182_v38 = vld [vmem:[#allocation3 + $0x88] sm:$0xff]  ;;  %v934_v24 = vld [vmem:[#allocation2 + $0x68] sm:$0xff]  ;;  %vm2492_vm2 = vmmov %vm2408_vm1 }
  0xb5   :  { %v613_v8 = vadd.f32 %v2462_v49, %v423_v54  ;;  %v967_v21 = vadd.f32 %v929_v56, %v781_v37  ;;  %v2464_v29 = vsel %vm1799_vm15, %v1797_v53, %v2463_v46  ;;  %v405_v6 = vmul.f32 %v291_v27, %v1538_v18  ;;  %v2481_v46 = vld [vmem:[#allocation56_spill] sm:$0xff]  ;;  %vm2502_vm8 = vmmov %vm2408_vm1 }
  0xb6   :  { %v612_v55 = vadd.f32 %v2464_v29, %v422_v1  ;;  %v2465_v60 = vmax.f32 %v1524_v62, 0.0  ;;  %v767_v20 = vmul.f32 %v748_v15, %v748_v15  ;;  %v747_v59 = vsub.f32 %v1918_v19, %v291_v27  ;;  %988 = vst.msk [vmem:[#allocation2 + $0x48] sm:$0xff] %vm2466_vm6, %v968_v39  ;;  %v2470_v62 = vld [vmem:[#allocation54_spill] sm:$0xff]  ;;  %v181_v19 = vld [vmem:[#allocation3 + $0x80] sm:$0xff]  ;;  %v272_v37 = vpop.permute.xlu1 %271  ;;  %v1002_v39 = vld [vmem:[#allocation2 + $0x8] sm:$0xff] }
  0xb7   :  { %v784_v5 = vmul.f32 %v765_v42, %v613_v8  ;;  %987 = vst.msk [vmem:[#allocation2 + $0x40] sm:$0xff] %vm2408_vm1, %v967_v21  ;;  %v2467_v53 = vmax.f32 %v1538_v18, 0.0  ;;  %v294_v41 = vmul.f32 %v262_v23, %v180_v7  ;;  %v293_v61 = vmul.f32 %v257_v16, %v179_v47  ;;  %v267_v42 = vpop.permute.xlu0 %266  ;;  %v933_v1 = vld [vmem:[#allocation2 + $0x60] sm:$0xff]  ;;  %v2484_v16 = vld [vmem:[#allocation55_spill] sm:$0xff]  ;;  %vm2503_vm4 = vmmov %vm2408_vm1 }
  0xb8   :  { %v425_v17 = vsub.f32 %v2465_v60, %v406_v12  ;;  %v783_v31 = vmul.f32 %v764_v63, %v612_v55  ;;  %vm2468_vm15 = vnez %v2347_v50  ;;  %v766_v14 = vmul.f32 %v747_v59, %v747_v59 }
  0xb9   :  { %v424_v25 = vsub.f32 %v2467_v53, %v405_v6  ;;  %v970_v28 = vadd.f32 %v932_v10, %v784_v5  ;;  %v2471_v0 = vsel %vm2468_vm15, %v2469_v52, %v2470_v62  ;;  %v1021_v54 = vsel %vm2472_vm3, %v1001_v45, 0.0  ;;  %v2480_v10 = vld [vmem:[#allocation53_spill] sm:$0xff]  ;;  %v2486_v45 = vld [vmem:[#allocation58_spill] sm:$0xff]  ;;  %v935_v53 = vld [vmem:[#allocation2 + $0x70] sm:$0xff] }
  0xba   :  { %v615_v56 = vadd.f32 %v2471_v0, %v425_v17  ;;  %v969_v30 = vadd.f32 %v931_v36, %v783_v31  ;;  %v2473_v18 = vsel %vm1828_vm10, %v1840_v57, %v1868_v32  ;;  %v408_v13 = vmul.f32 %v294_v41, %v1549_v40  ;;  %v2487_v5 = vld [vmem:[#allocation57_spill] sm:$0xff]  ;;  %v2493_v62 = vld [vmem:[#allocation59_spill] sm:$0xff] }
  0xbb   :  { %v614_v27 = vadd.f32 %v2473_v18, %v424_v25  ;;  %v750_v50 = vsub.f32 %v1926_v44, %v294_v41  ;;  %990 = vst.msk [vmem:[#allocation2 + $0x58] sm:$0xff] %vm2474_vm5, %v970_v28  ;;  %v407_v33 = vmul.f32 %v293_v61, %v1568_v11  ;;  %v749_v43 = vsub.f32 %v1960_v51, %v293_v61  ;;  %v183_v44 = vld [vmem:[#allocation3 + $0x90] sm:$0xff]  ;;  %v2478_v51 = vld [vmem:[#allocation52_spill] sm:$0xff]  ;;  %v277_v23 = vpop.permute.xlu0 %276 }
  0xbc   :  { %v786_v48 = vmul.f32 %v767_v20, %v615_v56  ;;  %v296_v58 = vmul.f32 %v272_v37, %v182_v38  ;;  %989 = vst.msk [vmem:[#allocation2 + $0x50] sm:$0xff] %vm2475_vm7, %v969_v30  ;;  %v2476_v57 = vmax.f32 %v1549_v40, 0.0  ;;  %v295_v8 = vmul.f32 %v267_v42, %v181_v19  ;;  %v1003_v38 = vld [vmem:[#allocation2 + $0x10] sm:$0xff]  ;;  %v938_v30 = vld [vmem:[#allocation2 + $0x88] sm:$0xff]  ;;  %v1004_v37 = vld [vmem:[#allocation2 + $0x18] sm:$0xff] }
  0xbd   :  { %v785_v34 = vmul.f32 %v766_v14, %v614_v27  ;;  %v769_v49 = vmul.f32 %v750_v50, %v750_v50  ;;  %v2477_v12 = vmax.f32 %v1568_v11, 0.0  ;;  %v768_v7 = vmul.f32 %v749_v43, %v749_v43  ;;  %v936_v11 = vld [vmem:[#allocation2 + $0x78] sm:$0xff]  ;;  %v2497_v18 = vld [vmem:[#allocation63_spill] sm:$0xff] }
  0xbe   :  { %v427_v32 = vsub.f32 %v2476_v57, %v408_v13  ;;  %v972_v63 = vadd.f32 %v934_v24, %v786_v48  ;;  %v410_v47 = vmul.f32 %v296_v58, %v1594_v22  ;;  %vm2479_vm10 = vnez %v2478_v51  ;;  %v1005_v57 = vld [vmem:[#allocation2 + $0x20] sm:$0xff]  ;;  %v939_v51 = vld [vmem:[#allocation2 + $0x90] sm:$0xff] }
  0xbf   :  { %v426_v15 = vsub.f32 %v2477_v12, %v407_v33  ;;  %v971_v21 = vadd.f32 %v933_v1, %v785_v34  ;;  %v2482_v29 = vsel %vm2479_vm10, %v2480_v10, %v2481_v46  ;;  %v752_v40 = vsub.f32 %v1968_v2, %v296_v58  ;;  %v937_v1 = vld [vmem:[#allocation2 + $0x80] sm:$0xff]  ;;  %v1007_v46 = vld [vmem:[#allocation2 + $0x30] sm:$0xff] }
  0xc0   :  { %v617_v55 = vadd.f32 %v2482_v29, %v427_v32  ;;  %v409_v6 = vmul.f32 %v295_v8, %v1604_v26  ;;  %992 = vst.msk [vmem:[#allocation2 + $0x68] sm:$0xff] %vm2483_vm9, %v972_v63  ;;  %vm2485_vm11 = vnez %v2484_v16  ;;  %v2489_v17 = vmax.f32 %v1594_v22, 0.0  ;;  %v2494_v22 = vld [vmem:[#allocation61_spill] sm:$0xff] }
  0xc1   :  { %v2488_v36 = vsel %vm2485_vm11, %v2486_v45, %v2487_v5  ;;  %v751_v59 = vsub.f32 %v1984_v35, %v295_v8  ;;  %v297_v31 = vmul.f32 %v277_v23, %v183_v44  ;;  %991 = vst.msk [vmem:[#allocation2 + $0x60] sm:$0xff] %vm2490_vm13, %v971_v21  ;;  %v771_v25 = vmul.f32 %v752_v40, %v752_v40  ;;  %v1008_v23 = vld [vmem:[#allocation2 + $0x38] sm:$0xff]  ;;  %v1009_v45 = vld [vmem:[#allocation2 + $0x40] sm:$0xff] }
  0xc2   :  { %v616_v60 = vadd.f32 %v2488_v36, %v426_v15  ;;  %v429_v20 = vsub.f32 %v2489_v17, %v410_v47  ;;  %v788_v2 = vmul.f32 %v769_v49, %v617_v55  ;;  %v2491_v41 = vmax.f32 %v1604_v26, 0.0  ;;  %v2498_v26 = vld [vmem:[#allocation62_spill] sm:$0xff]  ;;  %v1006_v47 = vld [vmem:[#allocation2 + $0x28] sm:$0xff] }
  0xc3   :  { %v1022_v28 = vsel %vm2492_vm2, %v1002_v39, 0.0  ;;  %v2495_v0 = vsel %vm1900_vm14, %v2493_v62, %v2494_v22  ;;  %v770_v35 = vmul.f32 %v751_v59, %v751_v59  ;;  %v411_v14 = vmul.f32 %v297_v31, %v1630_v4  ;;  %vm2501_vm14 = vmmov %vm2408_vm1  ;;  %v1011_v59 = vld [vmem:[#allocation2 + $0x50] sm:$0xff] }
  0xc4   :  { %v428_v61 = vsub.f32 %v2491_v41, %v409_v6  ;;  %v787_v52 = vmul.f32 %v768_v7, %v616_v60  ;;  %v619_v56 = vadd.f32 %v2495_v0, %v429_v20  ;;  %v974_v19 = vadd.f32 %v936_v11, %v788_v2  ;;  %v2509_v7 = vld [vmem:[#allocation60_spill] sm:$0xff]  ;;  %v1010_v60 = vld [vmem:[#allocation2 + $0x48] sm:$0xff] }
  0xc5   :  { %v2499_v27 = vsel %vm1942_vm0, %v2497_v18, %v2498_v26  ;;  %v753_v50 = vsub.f32 %v2055_v3, %v297_v31  ;;  %v1023_v42 = vadd.f32 %v1022_v28, %v1021_v54  ;;  %v2500_v33 = vmax.f32 %v1630_v4, 0.0  ;;  %v2505_v3 = vld [vmem:[#allocation66_spill] sm:$0xff]  ;;  %v2506_v54 = vld [vmem:[#allocation65_spill] sm:$0xff]  ;;  %vm2508_vm0 = vmmov %vm2408_vm1 }
  0xc6   :  { %v618_v13 = vadd.f32 %v2499_v27, %v428_v61  ;;  %v973_v9 = vadd.f32 %v935_v53, %v787_v52  ;;  %v790_v48 = vmul.f32 %v771_v25, %v619_v56  ;;  %v1024_v58 = vsel %vm2501_vm14, %v1003_v38, 0.0  ;;  %994 = vst.msk [vmem:[#allocation2 + $0x78] sm:$0xff] %vm2502_vm8, %v974_v19  ;;  %vm2510_vm1 = vmmov %vm2508_vm0  ;;  %v1012_v53 = vld [vmem:[#allocation2 + $0x58] sm:$0xff] }
  0xc7   :  { %v430_v43 = vsub.f32 %v2500_v33, %v411_v14  ;;  %v1025_v32 = vadd.f32 %v1024_v58, %v1023_v42  ;;  %v2507_v44 = vsel %vm1970_vm12, %v2505_v3, %v2506_v54  ;;  %v772_v12 = vmul.f32 %v753_v50, %v753_v50  ;;  %vm2511_vm15 = vmmov %vm2508_vm0  ;;  %v1014_v52 = vld [vmem:[#allocation2 + $0x68] sm:$0xff] }
  0xc8   :  { %v789_v34 = vmul.f32 %v770_v35, %v618_v13  ;;  %993 = vst.msk [vmem:[#allocation2 + $0x70] sm:$0xff] %vm2503_vm4, %v973_v9  ;;  %v976_v49 = vadd.f32 %v938_v30, %v790_v48  ;;  %v1026_v4 = vsel %vm2508_vm0, %v1004_v37, 0.0  ;;  %vm920_vm6 = vcmp.lt.s32.totalorder %v2509_v7, 150  ;;  %vm2512_vm3 = vmmov %vm2508_vm0  ;;  %v1013_v61 = vld [vmem:[#allocation2 + $0x60] sm:$0xff] }
  0xc9   :  { %v620_v63 = vadd.f32 %v2507_v44, %v430_v43  ;;  %v1027_v39 = vadd.f32 %v1026_v4, %v1025_v32  ;;  %v1028_v10 = vsel %vm2511_vm15, %v1005_v57, 0.0  ;;  %vm2513_vm12 = vmmov %vm2508_vm0 }
  0xca   :  { %v975_v15 = vadd.f32 %v937_v1, %v789_v34  ;;  %996 = vst.msk [vmem:[#allocation2 + $0x88] sm:$0xff] %vm2510_vm1, %v976_v49  ;;  %v1030_v40 = vsel %vm2513_vm12, %v1006_v47, 0.0  ;;  %vm2514_vm5 = vmmov %vm2508_vm0 }
  0xcb   :  { %v791_v21 = vmul.f32 %v772_v12, %v620_v63  ;;  %v1029_v29 = vadd.f32 %v1028_v10, %v1027_v39  ;;  %v1032_v16 = vsel %vm2514_vm5, %v1007_v46, 0.0  ;;  %vm2515_vm7 = vmmov %vm2508_vm0 }
  0xcc   :  { %995 = vst.msk [vmem:[#allocation2 + $0x80] sm:$0xff] %vm2512_vm3, %v975_v15  ;;  %vm2516_vm10 = vmmov %vm2508_vm0 }
  0xcd   :  { %v958_v55 = vsel %vm920_vm6, %v791_v21, 0.0  ;;  %v1031_v11 = vadd.f32 %v1030_v40, %v1029_v29  ;;  %v1034_v36 = vsel %vm2516_vm10, %v1008_v23, 0.0  ;;  %vm2517_vm9 = vmmov %vm2508_vm0  ;;  %v1016_v14 = vld [vmem:[#allocation2 + $0x78] sm:$0xff] }
  0xce   :  { %v977_v6 = vadd.f32 %v958_v55, %v939_v51  ;;  %v1036_v20 = vsel %vm2517_vm9, %v1009_v45, 0.0  ;;  %vm2518_vm11 = vmmov %vm2508_vm0  ;;  %v1050_v26 = vsel %vm2508_vm0, %v1016_v14, 0.0 }
  0xcf   :  { %v1033_v5 = vadd.f32 %v1032_v16, %v1031_v11  ;;  %v1038_v2 = vsel %vm2518_vm11, %v1010_v60, 0.0  ;;  %vm2519_vm13 = vmmov %vm2508_vm0  ;;  %v1015_v0 = vld [vmem:[#allocation2 + $0x70] sm:$0xff] }
  0xd0   :  { %997 = vst.msk [vmem:[#allocation2 + $0x90] sm:$0xff] %vm2515_vm7, %v977_v6  ;;  %v1040_v41 = vsel %vm2519_vm13, %v1011_v59, 0.0  ;;  %vm2520_vm2 = vmmov %vm2508_vm0 }
  0xd1   :  { %v1035_v17 = vadd.f32 %v1034_v36, %v1033_v5  ;;  %v1042_v28 = vsel %vm2520_vm2, %v1012_v53, 0.0  ;;  %vm2521_vm14 = vmmov %vm2508_vm0  ;;  %v1018_v27 = vld [vmem:[#allocation2 + $0x88] sm:$0xff] }
  0xd2   :  { %v1044_v22 = vsel %vm2521_vm14, %v1013_v61, 0.0  ;;  %vm2522_vm8 = vmmov %vm2508_vm0 }
  0xd3   :  { %v1037_v31 = vadd.f32 %v1036_v20, %v1035_v17  ;;  %v1046_v35 = vsel %vm2522_vm8, %v1014_v52, 0.0  ;;  %vm2523_vm4 = vmmov %vm2508_vm0  ;;  %v1017_v24 = vld [vmem:[#allocation2 + $0x80] sm:$0xff] }
  0xd4   :  { %v1048_v30 = vsel %vm2523_vm4, %v1015_v0, 0.0  ;;  %vm2524_vm6 = vmmov %vm2508_vm0 }
  0xd5   :  { %v1039_v25 = vadd.f32 %v1038_v2, %v1037_v31  ;;  %v1052_v37 = vsel %vm2524_vm6, %v1017_v24, 0.0  ;;  %vm2525_vm1 = vmmov %vm2508_vm0 }
  0xd6   :  { %v1054_v9 = vsel %vm2525_vm1, %v1018_v27, 0.0  ;;  %vm2526_vm15 = vmmov %vm2508_vm0 }
  0xd7   :  { %v1041_v38 = vadd.f32 %v1040_v41, %v1039_v25  ;;  %v1019_v13 = vld [vmem:[#allocation2 + $0x90] sm:$0xff] }
  0xd8   :  { %v1056_v48 = vsel %vm2526_vm15, %v1019_v13, 0.0 }
  0xd9   :  { %v1043_v62 = vadd.f32 %v1042_v28, %v1041_v38 }
  0xdb   :  { %v1045_v56 = vadd.f32 %v1044_v22, %v1043_v62 }
  0xdd   :  { %v1047_v19 = vadd.f32 %v1046_v35, %v1045_v56 }
  0xdf   :  { %v1049_v18 = vadd.f32 %v1048_v30, %v1047_v19 }
  0xe1   :  { %v1051_v50 = vadd.f32 %v1050_v26, %v1049_v18 }
  0xe3   :  { %v1053_v42 = vadd.f32 %v1052_v37, %v1051_v50 }
  0xe5   :  { %v1055_v1 = vadd.f32 %v1054_v9, %v1053_v42 }
  0xe7   :  { %v1057_v33 = vadd.f32 %v1056_v48, %v1055_v1 }
  0xe9   :  { %1058 = vadd.xlane.f32.xlu1 %v1057_v33 }
 0x176   :  { %v1059_v43 = vpop.xlane.xlu1 %1058 }
 0x177   :  { %v1060_v58 = vrot.slane %v1059_v43, 4 }
 0x179   :  { %v1061_v34 = vadd.f32 %v1060_v58, %v1059_v43 }
 0x17b   :  { %v1062_v57 = vrot.slane %v1061_v34, 2 }
 0x17d   :  { %v1063_v32 = vadd.f32 %v1062_v57, %v1061_v34 }
 0x17f   :  { %v1064_v49 = vrot.slane %v1063_v32, 1 }
 0x181   :  { %v1065_v8 = vadd.f32 %v1064_v49, %v1063_v32 }
 0x183   :  { %1098 = vpush %v1065_v8 }
 0x1b4   :  { %s1099_s17 = spop %1098 }
 0x1b5   :  { %v1067_v3 = vstv %s1099_s17 }
 0x1b6   :  { %1068 = vst [vmem:[#allocation6] sm:$0xff] %v1067_v3 }
 0x1b7   :  { %1255 = shalt.err (!%p1252_p12)
}
 0x1b8   :  { %s1256_s21 = scalar_lea.hbm %s2218_s3, 128 }
 0x1b9   :  { %p1257_p13 = scmp.ne.s32.totalorder %s2218_s3, %s1256_s21  ;;  %p1260_p0 = scmp.lt.u32.totalorder %s1256_s21, %s2218_s3 }
 0x1bb   :  { %p1262_p1 = pnand %p1260_p0, %p1257_p13 }
 0x1bd   :  { %1265 = shalt.err (!%p1262_p1)
}
 0x1be   :  { %1078 = dma.vmem_to_hbm [thread:$0]  %s1076_s16, 128, %s2218_s3, [#allocation5]  }
 0x1bf   :  { %1268 = dma.done.wait [#allocation5], 128  }
 0x1c0   :  { %1269 = vsyncadd [#allocation5], 4294967168 }
 0x1c1   :  { %1082 = vsyncpa [#allocation4], 1 }
 0x1c2   :  { %1083 = vsyncpa [#allocation5], 1 }

</bundles_post_ra>
